<compile_context>
chip_gen: v7x
topology: tpu7x:2x2x1
jax: 0.10.0
libtpu: 0.0.40
codegen_flags: <defaults>
</compile_context>

<pallas_src>
import functools

import jax
import jax.numpy as jnp
from jax.experimental import pallas as pl
from jax.experimental.pallas import tpu as pltpu


def _round_up(x, m):
    return (x + m - 1) // m * m


def _attention_kernel(decq_ref, elems_ref, we_ref, wv_ref, mask_ref, out_ref,
                      *, valid_t):
    """Grid = (batch_tiles, time_tiles).

    decq_ref  : (TB, H, 1)     f32      (per-batch decoder query, column layout)
    elems_ref : (TB, TT, 2H)   f32/bf16 (current time tile of encoded elements)
    we_ref    : (H, 2H)        f32/bf16 (resident)
    wv_ref    : (1, H, 1)      f32      (resident, column layout)
    mask_ref  : (TB, T_pad)    f32      (resident across time tiles)
    out_ref   : (TB, T_pad)    f32      (resident across time tiles)
    """
    t = pl.program_id(1)
    TB, TT, H2 = elems_ref.shape
    H = we_ref.shape[0]
    T_pad = out_ref.shape[1]

    # ---- MXU: enc_q[b, h, t] = sum_d We[h, d] * elems[b, t, d] -------------
    # Batched matmul emitting the transposed (h, t) layout directly so the
    # EUP/VPU stages below use all 128 lanes (T in lanes), not H.
    we_b = jnp.broadcast_to(we_ref[...][None], (TB, H, H2))
    enc_qt = jnp.einsum("bhd,btd->bht", we_b, elems_ref[...],
                        preferred_element_type=jnp.float32)          # (TB, H, TT) f32

    # ---- comparison = tanh(dec_q + enc_q)  (EUP, lane-dense) ---------------
    comp = jnp.tanh(decq_ref[...] + enc_qt)                          # (TB, H, TT)

    # ---- value projection: reduce over H (sublane reduce) ------------------
    scores = jnp.sum(comp * wv_ref[...], axis=1)                     # (TB, TT)

    # Lane-dense store of this time tile's raw scores into the resident block.
    ts = pl.multiple_of(t * TT, TT)
    out_ref[:, pl.ds(ts, TT)] = scores

    # ---- last time tile: mask + softmax over the full resident row ---------
    @pl.when(t == pl.num_programs(1) - 1)
    def _():
        s = out_ref[...]                                             # (TB, T_pad)
        s = jnp.where(mask_ref[...] == 0.0, jnp.float32(-1e9), s)
        col = jax.lax.broadcasted_iota(jnp.int32, (TB, T_pad), 1)
        # Padded time columns contribute exactly zero (keeps the fully-masked
        # row -> uniform-over-T behavior identical to PyTorch).
        s = jnp.where(col < valid_t, s, jnp.float32(-jnp.inf))
        m = jnp.max(s, axis=-1, keepdims=True)
        e = jnp.exp(s - m)
        out_ref[...] = e / jnp.sum(e, axis=-1, keepdims=True)


def attention_forward(encoded_elements, encoded_sequence, wd, we, wv,
                      attention_mask=None, *, block_b=None, block_t=None,
                      matmul_dtype=jnp.float32):
    """Pallas forward of the Attention module.

    encoded_elements : (B, T, 2H)
    encoded_sequence : (h, c) tuple; only h is used (viewed as (B, 2H)).
    wd, we           : (H, 2H)   nn.Linear weight layout (out_features, in_features)
    wv               : (1, H)
    attention_mask   : optional (B, T); positions where mask == 0 get -1e9.
    matmul_dtype     : jnp.float32 or jnp.bfloat16 for the big MXU matmul inputs
                       (accumulation / softmax always f32).
    """
    B, T, H2 = encoded_elements.shape
    H = H2 // 2
    assert wd.shape == (H, H2) and we.shape == (H, H2) and wv.shape == (1, H)

    # ---- hoisted decoder-query projection (depends only on batch) ----------
    seqh = encoded_sequence[0].reshape(B, -1).astype(jnp.float32)    # (B, 2H)
    dec_q = jnp.dot(seqh, wd.astype(jnp.float32).T)                  # (B, H)
    dec_q = dec_q[:, :, None]                                        # (B, H, 1) column layout

    if attention_mask is None:
        attention_mask = jnp.ones((B, T), jnp.float32)
    mask = attention_mask.astype(jnp.float32)

    # ---- pad to TPU-friendly shapes: B -> x8, T -> x128 (lane-dense out) ---
    B_pad = _round_up(B, 8)
    T_pad = _round_up(T, 128)
    elems = jnp.pad(encoded_elements.astype(matmul_dtype),
                    ((0, B_pad - B), (0, T_pad - T), (0, 0)))
    mask = jnp.pad(mask, ((0, B_pad - B), (0, T_pad - T)))           # padded -> masked
    dec_q = jnp.pad(dec_q, ((0, B_pad - B), (0, 0), (0, 0)))
    we_k = we.astype(matmul_dtype)                                   # (H, 2H)
    wv_k = wv.astype(jnp.float32).reshape(1, H, 1)                   # column layout

    # ---- tile selection (budgeted for v7x's smaller VMEM as well) ----------
    bytes_in = jnp.dtype(matmul_dtype).itemsize
    TB = block_b if block_b is not None else min(B_pad, 8)
    assert B_pad % TB == 0 and TB % 8 == 0

    if block_t is not None:
        TT = block_t
    else:
        budget = 16 * 1024 * 1024            # per-step working-set target
        TT = 128
        for cand in (T_pad, 2048, 1024, 512, 256, 128):
            if cand <= T_pad and T_pad % cand == 0:
                fp = (2 * TB * cand * H2 * bytes_in      # elems tile, double-buffered
                      + 3 * TB * H * cand * 4            # enc_qt / comp temporaries
                      + 4 * TB * T_pad * 4)              # resident out + mask blocks
                if fp <= budget:
                    TT = cand
                    break
    assert T_pad % TT == 0 and TT % 128 == 0

    grid = (B_pad // TB, T_pad // TT)
    kernel = functools.partial(_attention_kernel, valid_t=T)

    out = pl.pallas_call(
        kernel,
        out_shape=jax.ShapeDtypeStruct((B_pad, T_pad), jnp.float32),
        grid_spec=pltpu.PrefetchScalarGridSpec(
            num_scalar_prefetch=0,
            grid=grid,
            in_specs=[
                pl.BlockSpec((TB, H, 1), lambda b, t: (b, 0, 0)),      # dec_q
                pl.BlockSpec((TB, TT, H2), lambda b, t: (b, t, 0)),    # elems (streamed)
                pl.BlockSpec((H, H2), lambda b, t: (0, 0)),            # We (resident)
                pl.BlockSpec((1, H, 1), lambda b, t: (0, 0, 0)),       # Wv (resident)
                pl.BlockSpec((TB, T_pad), lambda b, t: (b, 0)),        # mask (resident over t)
            ],
            out_specs=pl.BlockSpec((TB, T_pad), lambda b, t: (b, 0)),  # resident over t
        ),
        compiler_params=pltpu.CompilerParams(
            dimension_semantics=("parallel", "arbitrary"),
            vmem_limit_bytes=48 * 1024 * 1024,
        ),
    )(dec_q, elems, we_k, wv_k, mask)

    return out[:B, :T]


def attention_reference(encoded_elements, encoded_sequence, wd, we, wv,
                        attention_mask=None):
    """Pure-JAX reference mirroring the PyTorch module (nn.Linear layout)."""
    B, T, H2 = encoded_elements.shape
    seqh = encoded_sequence[0].reshape(B, -1)
    dec_q = seqh @ wd.T                                             # (B, H)
    enc_q = jnp.einsum("btd,hd->bth", encoded_elements, we)         # (B, T, H)
    comp = jnp.tanh(dec_q[:, None, :] + enc_q)
    scores = jnp.einsum("bth,h->bt", comp, wv[0])
    if attention_mask is not None:
        scores = jnp.where(attention_mask == 0, -1e9, scores)
    return jax.nn.softmax(scores, axis=1)


if __name__ == "__main__":
    hidden_size = 32
    B, T = 16, 256
    H2 = 2 * hidden_size

    key = jax.random.PRNGKey(0)
    k_el, k_h, k_wd, k_we, k_wv = jax.random.split(key, 5)

    encoded_elements = jax.random.normal(k_el, (B, T, H2), jnp.float32)
    # encoded_sequence = (hidden_state, cell_state); only hidden is used.
    hidden_state = jax.random.normal(k_h, (B, H2), jnp.float32)
    cell_state = jnp.zeros((B, H2), jnp.float32)
    encoded_sequence = (hidden_state, cell_state)

    # nn.Linear-style deterministic init (weights in PyTorch (out, in) layout).
    bound = 1.0 / (H2 ** 0.5)
    wd = jax.random.uniform(k_wd, (hidden_size, H2), jnp.float32, -bound, bound)
    we = jax.random.uniform(k_we, (hidden_size, H2), jnp.float32, -bound, bound)
    bound_v = 1.0 / (hidden_size ** 0.5)
    wv = jax.random.uniform(k_wv, (1, hidden_size), jnp.float32, -bound_v, bound_v)

    # Mask out the tails of a couple of rows.
    attention_mask = jnp.ones((B, T), jnp.float32)
    attention_mask = attention_mask.at[1, -7:].set(0.0)
    attention_mask = attention_mask.at[5, T // 2:].set(0.0)

    ref = attention_reference(encoded_elements, encoded_sequence, wd, we, wv,
                              attention_mask)

    # Explicit small tiles -> grid (2, 2): exercises both the parallel batch
    # tiling and the resident-output accumulation over the time axis.
    out = attention_forward(encoded_elements, encoded_sequence, wd, we, wv,
                            attention_mask, block_b=8, block_t=128)
    out = jax.block_until_ready(out)
    assert out.shape == (B, T)
    assert jnp.allclose(out, ref, atol=1e-5, rtol=1e-5)
    assert jnp.allclose(jnp.sum(out, axis=1), 1.0, atol=1e-5)

    # Auto-selected tile sizes.
    out_auto = attention_forward(encoded_elements, encoded_sequence, wd, we, wv,
                                 attention_mask)
    out_auto = jax.block_until_ready(out_auto)
    assert jnp.allclose(out_auto, ref, atol=1e-5, rtol=1e-5)

    # bf16 MXU-input path (halves HBM->VMEM traffic for the dominant tensor);
    # accumulation, tanh and softmax remain f32.
    out_bf16 = attention_forward(encoded_elements, encoded_sequence, wd, we, wv,
                                 attention_mask, matmul_dtype=jnp.bfloat16)
    out_bf16 = jax.block_until_ready(out_bf16)
    assert jnp.allclose(out_bf16, ref, atol=5e-2, rtol=0)

    print("KERNEL_OK")
</pallas_src>

<mosaic_0001>
module attributes {stable_mosaic.version = 11 : i64} {
  func.func @_attention_kernel(%arg0: i32, %arg1: i32, %arg2: memref<8x32x1xf32, #tpu.memory_space<vmem>>, %arg3: memref<8x128x64xf32, #tpu.memory_space<vmem>>, %arg4: memref<32x64xf32, #tpu.memory_space<vmem>>, %arg5: memref<1x32x1xf32, #tpu.memory_space<vmem>>, %arg6: memref<8x256xf32, #tpu.memory_space<vmem>>, %arg7: memref<8x256xf32, #tpu.memory_space<vmem>>) attributes {dimension_semantics = [#tpu.dimension_semantics<parallel>, #tpu.dimension_semantics<arbitrary>], iteration_bounds = array<i64: 2, 2>, scalar_prefetch = 0 : i64, scratch_operands = 0 : i64, tpu.core_type = #tpu.core_type<tc>, window_params = [{transform_indices = @transform_0, window_bounds = array<i64: 8, 32, 1>}, {transform_indices = @transform_1, window_bounds = array<i64: 8, 128, 64>}, {pipeline_mode = #tpu.pipeline_mode<synchronous>, transform_indices = @transform_2, window_bounds = array<i64: 32, 64>}, {pipeline_mode = #tpu.pipeline_mode<synchronous>, transform_indices = @transform_3, window_bounds = array<i64: 1, 32, 1>}, {transform_indices = @transform_4, window_bounds = array<i64: 8, 256>}, {transform_indices = @transform_5, window_bounds = array<i64: 8, 256>}]} {
    %c0 = arith.constant 0 : index
    %c0_0 = arith.constant 0 : index
    %0 = vector.load %arg4[%c0, %c0_0] : memref<32x64xf32, #tpu.memory_space<vmem>>, vector<32x64xf32>
    %1 = vector.shape_cast %0 : vector<32x64xf32> to vector<1x32x64xf32>
    %2 = vector.shape_cast %1 : vector<1x32x64xf32> to vector<1x32x64xf32>
    %3 = vector.broadcast %2 : vector<1x32x64xf32> to vector<8x32x64xf32>
    %c0_1 = arith.constant 0 : index
    %c0_2 = arith.constant 0 : index
    %c0_3 = arith.constant 0 : index
    %4 = vector.load %arg3[%c0_1, %c0_2, %c0_3] : memref<8x128x64xf32, #tpu.memory_space<vmem>>, vector<8x128x64xf32>
    "tpu.trace_start"() <{level = 10 : i32, message = "bhd,btd->bht"}> : () -> ()
    %cst = arith.constant dense<0.000000e+00> : vector<8x32x128xf32>
    %5 = tpu.matmul %3, %4, %cst {dimension_numbers = #tpu.dot_dimension_numbers<[2], [2], [1], [1], [0, 0, 0, 1, 1, 1], [0], [0]>} : vector<8x32x64xf32>, vector<8x128x64xf32>, vector<8x32x128xf32> -> vector<8x32x128xf32>
    "tpu.trace_stop"() : () -> ()
    %c0_4 = arith.constant 0 : index
    %c0_5 = arith.constant 0 : index
    %c0_6 = arith.constant 0 : index
    %6 = vector.load %arg2[%c0_4, %c0_5, %c0_6] : memref<8x32x1xf32, #tpu.memory_space<vmem>>, vector<8x32x1xf32>
    %7 = vector.broadcast %6 : vector<8x32x1xf32> to vector<8x32x128xf32>
    %8 = arith.addf %7, %5 : vector<8x32x128xf32>
    %9 = math.tanh %8 : vector<8x32x128xf32>
    %c0_7 = arith.constant 0 : index
    %c0_8 = arith.constant 0 : index
    %c0_9 = arith.constant 0 : index
    %10 = vector.load %arg5[%c0_7, %c0_8, %c0_9] : memref<1x32x1xf32, #tpu.memory_space<vmem>>, vector<1x32x1xf32>
    %11 = vector.broadcast %10 : vector<1x32x1xf32> to vector<8x32x128xf32>
    %12 = arith.mulf %9, %11 : vector<8x32x128xf32>
    %cst_10 = arith.constant dense<0.000000e+00> : vector<8x128xf32>
    %13 = vector.multi_reduction <add>, %12, %cst_10 [1] : vector<8x32x128xf32> to vector<8x128xf32>
    %c128_i32 = arith.constant 128 : i32
    %14 = arith.muli %arg1, %c128_i32 : i32
    %15 = tpu.assume_multiple %14, 128 : i32
    %c0_11 = arith.constant 0 : index
    %16 = arith.index_cast %15 : i32 to index
    %17 = vector.load %arg7[%c0_11, %16] : memref<8x256xf32, #tpu.memory_space<vmem>>, vector<8x128xf32>
    tpu.vector_store %arg7[%c0_11, %16], %13 {strides = array<i32>} : memref<8x256xf32, #tpu.memory_space<vmem>>, vector<8x128xf32>,
    %c1_i32 = arith.constant 1 : i32
    %18 = arith.cmpi eq, %arg1, %c1_i32 : i32
    %19 = arith.extui %18 : i1 to i32
    %c0_i32 = arith.constant 0 : i32
    %20 = arith.cmpi ne, %19, %c0_i32 : i32
    scf.if %20 {
      %c0_12 = arith.constant 0 : index
      %c0_13 = arith.constant 0 : index
      %21 = vector.load %arg7[%c0_12, %c0_13] : memref<8x256xf32, #tpu.memory_space<vmem>>, vector<8x256xf32>
      %c0_14 = arith.constant 0 : index
      %c0_15 = arith.constant 0 : index
      %22 = vector.load %arg6[%c0_14, %c0_15] : memref<8x256xf32, #tpu.memory_space<vmem>>, vector<8x256xf32>
      %cst_16 = arith.constant 0.000000e+00 : f32
      %23 = vector.broadcast %cst_16 : f32 to vector<8x256xf32>
      %24 = arith.cmpf oeq, %22, %23 : vector<8x256xf32>
      %cst_17 = arith.constant -1.000000e+09 : f32
      %25 = vector.broadcast %cst_17 : f32 to vector<8x256xf32>
      %26 = arith.select %24, %25, %21 : vector<8x256xi1>, vector<8x256xf32>
      %27 = tpu.iota {dimensions = array<i32: 1>} : vector<8x256xi32>
      %c256_i32 = arith.constant 256 : i32
      %28 = vector.broadcast %c256_i32 : i32 to vector<8x256xi32>
      %29 = arith.cmpi slt, %27, %28 : vector<8x256xi32>
      %cst_18 = arith.constant 0xFF800000 : f32
      %30 = vector.broadcast %cst_18 : f32 to vector<8x256xf32>
      %31 = arith.select %29, %26, %30 : vector<8x256xi1>, vector<8x256xf32>
      %cst_19 = arith.constant dense<0xFF800000> : vector<8xf32>
      %32 = vector.multi_reduction <maximumf>, %31, %cst_19 [1] : vector<8x256xf32> to vector<8xf32>
      %33 = vector.shape_cast %32 : vector<8xf32> to vector<8x1xf32>
      %34 = vector.broadcast %33 : vector<8x1xf32> to vector<8x256xf32>
      %35 = arith.subf %31, %34 : vector<8x256xf32>
      %36 = math.exp %35 : vector<8x256xf32>
      %cst_20 = arith.constant dense<0.000000e+00> : vector<8xf32>
      %37 = vector.multi_reduction <add>, %36, %cst_20 [1] : vector<8x256xf32> to vector<8xf32>
      %38 = vector.shape_cast %37 : vector<8xf32> to vector<8x1xf32>
      %39 = vector.broadcast %38 : vector<8x1xf32> to vector<8x256xf32>
      %40 = arith.divf %36, %39 : vector<8x256xf32>
      %c0_21 = arith.constant 0 : index
      %c0_22 = arith.constant 0 : index
      %41 = vector.load %arg7[%c0_21, %c0_22] : memref<8x256xf32, #tpu.memory_space<vmem>>, vector<8x256xf32>
      tpu.vector_store %arg7[%c0_21, %c0_22], %40 {strides = array<i32>} : memref<8x256xf32, #tpu.memory_space<vmem>>, vector<8x256xf32>,
    } else {
    }
    return
  }
  func.func @transform_0(%arg0: i32, %arg1: i32) -> (i32, i32, i32) {
    %c0_i32 = arith.constant 0 : i32
    %c0_i32_0 = arith.constant 0 : i32
    %c0_i32_1 = arith.constant 0 : i32
    return %arg0, %c0_i32, %c0_i32_0 : i32, i32, i32
  }
  func.func @transform_1(%arg0: i32, %arg1: i32) -> (i32, i32, i32) {
    %c0_i32 = arith.constant 0 : i32
    %c0_i32_0 = arith.constant 0 : i32
    return %arg0, %arg1, %c0_i32 : i32, i32, i32
  }
  func.func @transform_2(%arg0: i32, %arg1: i32) -> (i32, i32) {
    %c0_i32 = arith.constant 0 : i32
    %c0_i32_0 = arith.constant 0 : i32
    %c0_i32_1 = arith.constant 0 : i32
    return %c0_i32, %c0_i32_0 : i32, i32
  }
  func.func @transform_3(%arg0: i32, %arg1: i32) -> (i32, i32, i32) {
    %c0_i32 = arith.constant 0 : i32
    %c0_i32_0 = arith.constant 0 : i32
    %c0_i32_1 = arith.constant 0 : i32
    %c0_i32_2 = arith.constant 0 : i32
    return %c0_i32, %c0_i32_0, %c0_i32_1 : i32, i32, i32
  }
  func.func @transform_4(%arg0: i32, %arg1: i32) -> (i32, i32) {
    %c0_i32 = arith.constant 0 : i32
    %c0_i32_0 = arith.constant 0 : i32
    return %arg0, %c0_i32 : i32, i32
  }
  func.func @transform_5(%arg0: i32, %arg1: i32) -> (i32, i32) {
    %c0_i32 = arith.constant 0 : i32
    %c0_i32_0 = arith.constant 0 : i32
    return %arg0, %c0_i32 : i32, i32
  }
}

</mosaic_0001>

<bundles_post_ra>
// kernel: tpu_custom_call.1
= control target key start
LH: loop header
LB: loop body
LE: loop exit
PB: predicated region body
PF: predicated region fallthrough
CT: control target
= control target key end

     0   :  { %10 = vsyncpa [#allocation4], 0  ;;  %s5057_s0 = inlined_call_operand.vmem [shape: f32[16,32,1], index: 0, kind: input, shape index: {}]   ;;  %s5058_s1 = inlined_call_operand.vmem [shape: f32[16,256,64], index: 1, kind: input, shape index: {}]   ;;  %s5059_s2 = inlined_call_operand.vmem [shape: f32[32,64], index: 2, kind: input, shape index: {}]   ;;  %s5060_s3 = inlined_call_operand.vmem [shape: f32[1,32,1], index: 3, kind: input, shape index: {}]   ;;  %s5061_s4 = inlined_call_operand.vmem [shape: f32[16,256], index: 4, kind: input, shape index: {}]   ;;  %s5062_s5 = inlined_call_operand.hbm [shape: f32[16,256], index: 5, kind: output, shape index: {}]  }
   0x1   :  { %12 = vsyncpa [#allocation4 + $0x1], 0  ;;  %s3949_s18 = smov 0   ;;  %s3951_s19 = smov 0  }
   0x2   :  { %s3953_s20 = smov 0   ;;  %s3955_s21 = smov 0  }
   0x3   :  { %s3957_s22 = smov 0   ;;  %s3959_s23 = smov 0  }
   0x4   :  { %s3961_s24 = smov 0   ;;  %s3963_s25 = smov 0  }
   0x5   :  { %s3965_s26 = smov 0   ;;  %s3967_s27 = smov 0  }
   0x6 LB: > { %s2608_s28 = sadd.s32 4294967295, %s3915_s27   ;;  %s2609_s29 = sadd.s32 4294967294, %s3915_s27   ;;  %s3915_s27 = sphi %s3967_s27, %s18_s27   ;;  %s3911_s26 = sphi %s3965_s26, %s5079_s26   ;;  %s3907_s25 = sphi %s3963_s25, %s5078_s25   ;;  %s3903_s24 = sphi %s3961_s24, %s5077_s24   ;;  %s3899_s23 = sphi %s3959_s23, %s5076_s23   ;;  %s3895_s22 = sphi %s3957_s22, %s5075_s22   ;;  %s3891_s21 = sphi %s3955_s21, %s5074_s21   ;;  %s3887_s20 = sphi %s3953_s20, %s5073_s20   ;;  %s3883_s19 = sphi %s3951_s19, %s5072_s19   ;;  %s3879_s18 = sphi %s3949_s18, %s5071_s18  }
   0x7   : > { %s27_s30 = sadd.s32 1, %s3907_s25  ;;  %s30_s6 = sadd.s32 1, %s3911_s26 }
   0x8   : > { %p28_p0 = scmp.ge.s32.totalorder %s27_s30, 2  ;;  %s65_s7 = sadd.s32 1, %s3895_s22 }
   0x9   : > { %p72_p1 = scmp.ne.s32.totalorder %s3895_s22, %s3891_s21  ;;  %p73_p2 = scmp.eq.s32.totalorder %s3915_s27, 0 }
   0xa   : > { %s5081_s30 = smov (%p28_p0, %s27_s30), 0  ;;  %s5083_s6 = smov (!%p28_p0, %s30_s6), %s3911_s26 }
   0xb   : > { %s61_s8 = ssub.s32 %s3907_s25, %s5081_s30  ;;  %p4012_p3 = por %p73_p2, %p72_p1 }
   0xc   : > { %p32_p4 = scmp.ge.s32.totalorder %s5083_s6, 2  ;;  %s159_s10 = sadd.s32 1, %s3887_s20 }
   0xd   : > { %p169_p5 = scmp.ne.s32.totalorder %s3887_s20, %s3883_s19  ;;  %p170_p6 = scmp.eq.s32.totalorder %s2608_s28, 3 }
   0xe   : > { %s5085_s6 = smov (%p32_p4, %s5083_s6), 0  ;;  %p175_p8 = scmp.ne.s32.totalorder %s3883_s19, %s3879_s18 }
   0xf   : > { %5065 = sst [smem:[#allocation6_spill]] %s5085_s6  ;;  %p4021_p7 = por %p170_p6, %p169_p5 }
  0x10   : > { %s60_s12 = ssub.s32 %s3911_s26, %s5085_s6  ;;  %p176_p9 = scmp.eq.s32.totalorder %s2609_s29, 3 }
  0x11   : > { %s62_s13 = sor.u32 %s61_s8, %s60_s12  ;;  %p157_p10 = scmp.eq.s32.totalorder %s60_s12, 0 }
  0x12   : > { %p63_p11 = scmp.eq.s32.totalorder %s62_s13, 0  ;;  %p4029_p12 = por %p176_p9, %p175_p8 }
  0x13   : > { %s4034_s15 = scalar_select %p157_p10, %s3887_s20, %s159_s10  }
  0x14   : > { %s4037_s16 = scalar_select %p63_p11, %s3895_s22, %s65_s7  }
  0x15   : > { %p2611_p13 = scmp.ge.s32.totalorder %s3915_s27, 4 }
  0x17   : > { %198 = sbr.rel (%p2611_p13) target bundleno = 101 (0x65), region = 24 }
  0x1e   : > { %211 = sbr.rel (!%p4012_p3) target bundleno = 101 (0x65), region = 32  ;;  %s213_s17 = sand.u32 (%p4012_p3), 1, %s3895_s22  }
  0x1f   : > { %s2614_s28 = sshll.u32 (%p4012_p3), %s3907_s25, 4  ;;  %s2612_s29 = sshll.u32 (%p4012_p3), %s213_s17, 10 }
  0x20   : > { %s2793_s8 = sshll.u32 (%p4012_p3), %s3911_s26, 8  ;;  %s4053_s9 = scalar_lea.vmem (%p4012_p3), [#allocation2], %s2612_s29 }
  0x21   : > { %s219_s12 = sadd.s32 (%p4012_p3), %s2793_s8, %s2614_s28 }
  0x22   : > { %s2616_s13 = sshll.u32 (%p4012_p3), %s219_s12, 3 }
  0x23   : > { %s4048_s7 = scalar_lea.vmem (%p4012_p3), %s5058_s1, %s2616_s13 }
  0x24   : > { %v503_v0 = vld [vmem:[%s4048_s7] sm:$0xff] (%p4012_p3)  ;;  %v505_v1 = vld [vmem:[%s4048_s7 + $0x8] sm:$0xff] (%p4012_p3)  ;;  %v507_v2 = vld [vmem:[%s4048_s7 + $0x10] sm:$0xff] (%p4012_p3) }
  0x25   : > { %504 = vst [vmem:[%s4053_s9] sm:$0xff] %v503_v0  ;;  %506 = vst [vmem:[%s4053_s9 + $0x8] sm:$0xff] %v505_v1  ;;  %v509_v3 = vld [vmem:[%s4048_s7 + $0x18] sm:$0xff]  ;;  %v511_v4 = vld [vmem:[%s4048_s7 + $0x20] sm:$0xff] }
  0x26   : > { %508 = vst [vmem:[%s4053_s9 + $0x10] sm:$0xff] %v507_v2  ;;  %v513_v5 = vld [vmem:[%s4048_s7 + $0x28] sm:$0xff]  ;;  %510 = vst [vmem:[%s4053_s9 + $0x18] sm:$0xff] %v509_v3  ;;  %v515_v6 = vld [vmem:[%s4048_s7 + $0x30] sm:$0xff] }
  0x27   : > { %512 = vst [vmem:[%s4053_s9 + $0x20] sm:$0xff] %v511_v4  ;;  %514 = vst [vmem:[%s4053_s9 + $0x28] sm:$0xff] %v513_v5  ;;  %v517_v7 = vld [vmem:[%s4048_s7 + $0x38] sm:$0xff]  ;;  %v519_v8 = vld [vmem:[%s4048_s7 + $0x40] sm:$0xff] }
  0x28   : > { %516 = vst [vmem:[%s4053_s9 + $0x30] sm:$0xff] %v515_v6  ;;  %518 = vst [vmem:[%s4053_s9 + $0x38] sm:$0xff] %v517_v7  ;;  %v521_v9 = vld [vmem:[%s4048_s7 + $0x48] sm:$0xff]  ;;  %v523_v10 = vld [vmem:[%s4048_s7 + $0x50] sm:$0xff] }
  0x29   : > { %520 = vst [vmem:[%s4053_s9 + $0x40] sm:$0xff] %v519_v8  ;;  %v525_v11 = vld [vmem:[%s4048_s7 + $0x58] sm:$0xff]  ;;  %522 = vst [vmem:[%s4053_s9 + $0x48] sm:$0xff] %v521_v9  ;;  %v527_v12 = vld [vmem:[%s4048_s7 + $0x60] sm:$0xff] }
  0x2a   : > { %524 = vst [vmem:[%s4053_s9 + $0x50] sm:$0xff] %v523_v10  ;;  %526 = vst [vmem:[%s4053_s9 + $0x58] sm:$0xff] %v525_v11  ;;  %v529_v13 = vld [vmem:[%s4048_s7 + $0x68] sm:$0xff]  ;;  %v531_v14 = vld [vmem:[%s4048_s7 + $0x70] sm:$0xff] }
  0x2b   : > { %528 = vst [vmem:[%s4053_s9 + $0x60] sm:$0xff] %v527_v12  ;;  %530 = vst [vmem:[%s4053_s9 + $0x68] sm:$0xff] %v529_v13  ;;  %v533_v15 = vld [vmem:[%s4048_s7 + $0x78] sm:$0xff]  ;;  %v535_v16 = vld [vmem:[%s4048_s7 + $0x100] sm:$0xff] }
  0x2c   : > { %532 = vst [vmem:[%s4053_s9 + $0x70] sm:$0xff] %v531_v14  ;;  %v537_v17 = vld [vmem:[%s4048_s7 + $0x108] sm:$0xff]  ;;  %534 = vst [vmem:[%s4053_s9 + $0x78] sm:$0xff] %v533_v15  ;;  %v539_v18 = vld [vmem:[%s4048_s7 + $0x110] sm:$0xff] }
  0x2d   : > { %536 = vst [vmem:[%s4053_s9 + $0x80] sm:$0xff] %v535_v16  ;;  %538 = vst [vmem:[%s4053_s9 + $0x88] sm:$0xff] %v537_v17  ;;  %v541_v19 = vld [vmem:[%s4048_s7 + $0x118] sm:$0xff]  ;;  %v543_v20 = vld [vmem:[%s4048_s7 + $0x120] sm:$0xff] }
  0x2e   : > { %540 = vst [vmem:[%s4053_s9 + $0x90] sm:$0xff] %v539_v18  ;;  %542 = vst [vmem:[%s4053_s9 + $0x98] sm:$0xff] %v541_v19  ;;  %v545_v21 = vld [vmem:[%s4048_s7 + $0x128] sm:$0xff]  ;;  %v547_v22 = vld [vmem:[%s4048_s7 + $0x130] sm:$0xff] }
  0x2f   : > { %544 = vst [vmem:[%s4053_s9 + $0xa0] sm:$0xff] %v543_v20  ;;  %v549_v23 = vld [vmem:[%s4048_s7 + $0x138] sm:$0xff]  ;;  %546 = vst [vmem:[%s4053_s9 + $0xa8] sm:$0xff] %v545_v21  ;;  %v551_v24 = vld [vmem:[%s4048_s7 + $0x140] sm:$0xff] }
  0x30   : > { %548 = vst [vmem:[%s4053_s9 + $0xb0] sm:$0xff] %v547_v22  ;;  %550 = vst [vmem:[%s4053_s9 + $0xb8] sm:$0xff] %v549_v23  ;;  %v553_v25 = vld [vmem:[%s4048_s7 + $0x148] sm:$0xff]  ;;  %v555_v26 = vld [vmem:[%s4048_s7 + $0x150] sm:$0xff] }
  0x31   : > { %552 = vst [vmem:[%s4053_s9 + $0xc0] sm:$0xff] %v551_v24  ;;  %554 = vst [vmem:[%s4053_s9 + $0xc8] sm:$0xff] %v553_v25  ;;  %v557_v27 = vld [vmem:[%s4048_s7 + $0x158] sm:$0xff]  ;;  %v559_v28 = vld [vmem:[%s4048_s7 + $0x160] sm:$0xff] }
  0x32   : > { %556 = vst [vmem:[%s4053_s9 + $0xd0] sm:$0xff] %v555_v26  ;;  %v561_v29 = vld [vmem:[%s4048_s7 + $0x168] sm:$0xff]  ;;  %558 = vst [vmem:[%s4053_s9 + $0xd8] sm:$0xff] %v557_v27  ;;  %v563_v30 = vld [vmem:[%s4048_s7 + $0x170] sm:$0xff] }
  0x33   : > { %560 = vst [vmem:[%s4053_s9 + $0xe0] sm:$0xff] %v559_v28  ;;  %562 = vst [vmem:[%s4053_s9 + $0xe8] sm:$0xff] %v561_v29  ;;  %v565_v31 = vld [vmem:[%s4048_s7 + $0x178] sm:$0xff]  ;;  %v567_v32 = vld [vmem:[%s4048_s7 + $0x200] sm:$0xff] }
  0x34   : > { %564 = vst [vmem:[%s4053_s9 + $0xf0] sm:$0xff] %v563_v30  ;;  %566 = vst [vmem:[%s4053_s9 + $0xf8] sm:$0xff] %v565_v31  ;;  %v569_v33 = vld [vmem:[%s4048_s7 + $0x208] sm:$0xff]  ;;  %v571_v34 = vld [vmem:[%s4048_s7 + $0x210] sm:$0xff] }
  0x35   : > { %568 = vst [vmem:[%s4053_s9 + $0x100] sm:$0xff] %v567_v32  ;;  %v573_v35 = vld [vmem:[%s4048_s7 + $0x218] sm:$0xff]  ;;  %570 = vst [vmem:[%s4053_s9 + $0x108] sm:$0xff] %v569_v33  ;;  %v575_v36 = vld [vmem:[%s4048_s7 + $0x220] sm:$0xff] }
  0x36   : > { %572 = vst [vmem:[%s4053_s9 + $0x110] sm:$0xff] %v571_v34  ;;  %574 = vst [vmem:[%s4053_s9 + $0x118] sm:$0xff] %v573_v35  ;;  %v577_v37 = vld [vmem:[%s4048_s7 + $0x228] sm:$0xff]  ;;  %v579_v38 = vld [vmem:[%s4048_s7 + $0x230] sm:$0xff] }
  0x37   : > { %576 = vst [vmem:[%s4053_s9 + $0x120] sm:$0xff] %v575_v36  ;;  %578 = vst [vmem:[%s4053_s9 + $0x128] sm:$0xff] %v577_v37  ;;  %v581_v39 = vld [vmem:[%s4048_s7 + $0x238] sm:$0xff]  ;;  %v583_v40 = vld [vmem:[%s4048_s7 + $0x240] sm:$0xff] }
  0x38   : > { %580 = vst [vmem:[%s4053_s9 + $0x130] sm:$0xff] %v579_v38  ;;  %v585_v41 = vld [vmem:[%s4048_s7 + $0x248] sm:$0xff]  ;;  %582 = vst [vmem:[%s4053_s9 + $0x138] sm:$0xff] %v581_v39  ;;  %v587_v42 = vld [vmem:[%s4048_s7 + $0x250] sm:$0xff] }
  0x39   : > { %584 = vst [vmem:[%s4053_s9 + $0x140] sm:$0xff] %v583_v40  ;;  %586 = vst [vmem:[%s4053_s9 + $0x148] sm:$0xff] %v585_v41  ;;  %v589_v43 = vld [vmem:[%s4048_s7 + $0x258] sm:$0xff]  ;;  %v591_v44 = vld [vmem:[%s4048_s7 + $0x260] sm:$0xff] }
  0x3a   : > { %588 = vst [vmem:[%s4053_s9 + $0x150] sm:$0xff] %v587_v42  ;;  %590 = vst [vmem:[%s4053_s9 + $0x158] sm:$0xff] %v589_v43  ;;  %v593_v45 = vld [vmem:[%s4048_s7 + $0x268] sm:$0xff]  ;;  %v595_v46 = vld [vmem:[%s4048_s7 + $0x270] sm:$0xff] }
  0x3b   : > { %592 = vst [vmem:[%s4053_s9 + $0x160] sm:$0xff] %v591_v44  ;;  %v597_v47 = vld [vmem:[%s4048_s7 + $0x278] sm:$0xff]  ;;  %594 = vst [vmem:[%s4053_s9 + $0x168] sm:$0xff] %v593_v45  ;;  %v599_v48 = vld [vmem:[%s4048_s7 + $0x300] sm:$0xff] }
  0x3c   : > { %596 = vst [vmem:[%s4053_s9 + $0x170] sm:$0xff] %v595_v46  ;;  %598 = vst [vmem:[%s4053_s9 + $0x178] sm:$0xff] %v597_v47  ;;  %v601_v49 = vld [vmem:[%s4048_s7 + $0x308] sm:$0xff]  ;;  %v603_v50 = vld [vmem:[%s4048_s7 + $0x310] sm:$0xff] }
  0x3d   : > { %600 = vst [vmem:[%s4053_s9 + $0x180] sm:$0xff] %v599_v48  ;;  %602 = vst [vmem:[%s4053_s9 + $0x188] sm:$0xff] %v601_v49  ;;  %v605_v51 = vld [vmem:[%s4048_s7 + $0x318] sm:$0xff]  ;;  %v607_v52 = vld [vmem:[%s4048_s7 + $0x320] sm:$0xff] }
  0x3e   : > { %604 = vst [vmem:[%s4053_s9 + $0x190] sm:$0xff] %v603_v50  ;;  %v609_v53 = vld [vmem:[%s4048_s7 + $0x328] sm:$0xff]  ;;  %606 = vst [vmem:[%s4053_s9 + $0x198] sm:$0xff] %v605_v51  ;;  %v611_v54 = vld [vmem:[%s4048_s7 + $0x330] sm:$0xff] }
  0x3f   : > { %608 = vst [vmem:[%s4053_s9 + $0x1a0] sm:$0xff] %v607_v52  ;;  %610 = vst [vmem:[%s4053_s9 + $0x1a8] sm:$0xff] %v609_v53  ;;  %v613_v55 = vld [vmem:[%s4048_s7 + $0x338] sm:$0xff]  ;;  %v615_v56 = vld [vmem:[%s4048_s7 + $0x340] sm:$0xff] }
  0x40   : > { %612 = vst [vmem:[%s4053_s9 + $0x1b0] sm:$0xff] %v611_v54  ;;  %614 = vst [vmem:[%s4053_s9 + $0x1b8] sm:$0xff] %v613_v55  ;;  %v617_v57 = vld [vmem:[%s4048_s7 + $0x348] sm:$0xff]  ;;  %v619_v58 = vld [vmem:[%s4048_s7 + $0x350] sm:$0xff] }
  0x41   : > { %616 = vst [vmem:[%s4053_s9 + $0x1c0] sm:$0xff] %v615_v56  ;;  %v621_v59 = vld [vmem:[%s4048_s7 + $0x358] sm:$0xff]  ;;  %618 = vst [vmem:[%s4053_s9 + $0x1c8] sm:$0xff] %v617_v57  ;;  %v623_v60 = vld [vmem:[%s4048_s7 + $0x360] sm:$0xff] }
  0x42   : > { %620 = vst [vmem:[%s4053_s9 + $0x1d0] sm:$0xff] %v619_v58  ;;  %622 = vst [vmem:[%s4053_s9 + $0x1d8] sm:$0xff] %v621_v59  ;;  %v625_v61 = vld [vmem:[%s4048_s7 + $0x368] sm:$0xff]  ;;  %v627_v62 = vld [vmem:[%s4048_s7 + $0x370] sm:$0xff] }
  0x43   : > { %624 = vst [vmem:[%s4053_s9 + $0x1e0] sm:$0xff] %v623_v60  ;;  %626 = vst [vmem:[%s4053_s9 + $0x1e8] sm:$0xff] %v625_v61  ;;  %v629_v63 = vld [vmem:[%s4048_s7 + $0x378] sm:$0xff]  ;;  %v631_v0 = vld [vmem:[%s4048_s7 + $0x400] sm:$0xff] }
  0x44   : > { %628 = vst [vmem:[%s4053_s9 + $0x1f0] sm:$0xff] %v627_v62  ;;  %v633_v1 = vld [vmem:[%s4048_s7 + $0x408] sm:$0xff]  ;;  %630 = vst [vmem:[%s4053_s9 + $0x1f8] sm:$0xff] %v629_v63  ;;  %v635_v2 = vld [vmem:[%s4048_s7 + $0x410] sm:$0xff] }
  0x45   : > { %632 = vst [vmem:[%s4053_s9 + $0x200] sm:$0xff] %v631_v0  ;;  %634 = vst [vmem:[%s4053_s9 + $0x208] sm:$0xff] %v633_v1  ;;  %v637_v3 = vld [vmem:[%s4048_s7 + $0x418] sm:$0xff]  ;;  %v639_v4 = vld [vmem:[%s4048_s7 + $0x420] sm:$0xff] }
  0x46   : > { %636 = vst [vmem:[%s4053_s9 + $0x210] sm:$0xff] %v635_v2  ;;  %638 = vst [vmem:[%s4053_s9 + $0x218] sm:$0xff] %v637_v3  ;;  %v641_v5 = vld [vmem:[%s4048_s7 + $0x428] sm:$0xff]  ;;  %v643_v6 = vld [vmem:[%s4048_s7 + $0x430] sm:$0xff] }
  0x47   : > { %640 = vst [vmem:[%s4053_s9 + $0x220] sm:$0xff] %v639_v4  ;;  %v645_v7 = vld [vmem:[%s4048_s7 + $0x438] sm:$0xff]  ;;  %642 = vst [vmem:[%s4053_s9 + $0x228] sm:$0xff] %v641_v5  ;;  %v647_v8 = vld [vmem:[%s4048_s7 + $0x440] sm:$0xff] }
  0x48   : > { %644 = vst [vmem:[%s4053_s9 + $0x230] sm:$0xff] %v643_v6  ;;  %646 = vst [vmem:[%s4053_s9 + $0x238] sm:$0xff] %v645_v7  ;;  %v649_v9 = vld [vmem:[%s4048_s7 + $0x448] sm:$0xff]  ;;  %v651_v10 = vld [vmem:[%s4048_s7 + $0x450] sm:$0xff] }
  0x49   : > { %648 = vst [vmem:[%s4053_s9 + $0x240] sm:$0xff] %v647_v8  ;;  %650 = vst [vmem:[%s4053_s9 + $0x248] sm:$0xff] %v649_v9  ;;  %v653_v11 = vld [vmem:[%s4048_s7 + $0x458] sm:$0xff]  ;;  %v655_v12 = vld [vmem:[%s4048_s7 + $0x460] sm:$0xff] }
  0x4a   : > { %652 = vst [vmem:[%s4053_s9 + $0x250] sm:$0xff] %v651_v10  ;;  %v657_v13 = vld [vmem:[%s4048_s7 + $0x468] sm:$0xff]  ;;  %654 = vst [vmem:[%s4053_s9 + $0x258] sm:$0xff] %v653_v11  ;;  %v659_v14 = vld [vmem:[%s4048_s7 + $0x470] sm:$0xff] }
  0x4b   : > { %656 = vst [vmem:[%s4053_s9 + $0x260] sm:$0xff] %v655_v12  ;;  %658 = vst [vmem:[%s4053_s9 + $0x268] sm:$0xff] %v657_v13  ;;  %v661_v15 = vld [vmem:[%s4048_s7 + $0x478] sm:$0xff]  ;;  %v663_v16 = vld [vmem:[%s4048_s7 + $0x500] sm:$0xff] }
  0x4c   : > { %660 = vst [vmem:[%s4053_s9 + $0x270] sm:$0xff] %v659_v14  ;;  %662 = vst [vmem:[%s4053_s9 + $0x278] sm:$0xff] %v661_v15  ;;  %v665_v17 = vld [vmem:[%s4048_s7 + $0x508] sm:$0xff]  ;;  %v667_v18 = vld [vmem:[%s4048_s7 + $0x510] sm:$0xff] }
  0x4d   : > { %664 = vst [vmem:[%s4053_s9 + $0x280] sm:$0xff] %v663_v16  ;;  %v669_v19 = vld [vmem:[%s4048_s7 + $0x518] sm:$0xff]  ;;  %666 = vst [vmem:[%s4053_s9 + $0x288] sm:$0xff] %v665_v17  ;;  %v671_v20 = vld [vmem:[%s4048_s7 + $0x520] sm:$0xff] }
  0x4e   : > { %668 = vst [vmem:[%s4053_s9 + $0x290] sm:$0xff] %v667_v18  ;;  %670 = vst [vmem:[%s4053_s9 + $0x298] sm:$0xff] %v669_v19  ;;  %v673_v21 = vld [vmem:[%s4048_s7 + $0x528] sm:$0xff]  ;;  %v675_v22 = vld [vmem:[%s4048_s7 + $0x530] sm:$0xff] }
  0x4f   : > { %672 = vst [vmem:[%s4053_s9 + $0x2a0] sm:$0xff] %v671_v20  ;;  %674 = vst [vmem:[%s4053_s9 + $0x2a8] sm:$0xff] %v673_v21  ;;  %v677_v23 = vld [vmem:[%s4048_s7 + $0x538] sm:$0xff]  ;;  %v679_v24 = vld [vmem:[%s4048_s7 + $0x540] sm:$0xff] }
  0x50   : > { %676 = vst [vmem:[%s4053_s9 + $0x2b0] sm:$0xff] %v675_v22  ;;  %v681_v25 = vld [vmem:[%s4048_s7 + $0x548] sm:$0xff]  ;;  %678 = vst [vmem:[%s4053_s9 + $0x2b8] sm:$0xff] %v677_v23  ;;  %v683_v26 = vld [vmem:[%s4048_s7 + $0x550] sm:$0xff] }
  0x51   : > { %680 = vst [vmem:[%s4053_s9 + $0x2c0] sm:$0xff] %v679_v24  ;;  %682 = vst [vmem:[%s4053_s9 + $0x2c8] sm:$0xff] %v681_v25  ;;  %v685_v27 = vld [vmem:[%s4048_s7 + $0x558] sm:$0xff]  ;;  %v687_v28 = vld [vmem:[%s4048_s7 + $0x560] sm:$0xff] }
  0x52   : > { %684 = vst [vmem:[%s4053_s9 + $0x2d0] sm:$0xff] %v683_v26  ;;  %686 = vst [vmem:[%s4053_s9 + $0x2d8] sm:$0xff] %v685_v27  ;;  %v689_v29 = vld [vmem:[%s4048_s7 + $0x568] sm:$0xff]  ;;  %v691_v30 = vld [vmem:[%s4048_s7 + $0x570] sm:$0xff] }
  0x53   : > { %688 = vst [vmem:[%s4053_s9 + $0x2e0] sm:$0xff] %v687_v28  ;;  %v693_v31 = vld [vmem:[%s4048_s7 + $0x578] sm:$0xff]  ;;  %690 = vst [vmem:[%s4053_s9 + $0x2e8] sm:$0xff] %v689_v29  ;;  %v695_v32 = vld [vmem:[%s4048_s7 + $0x600] sm:$0xff] }
  0x54   : > { %692 = vst [vmem:[%s4053_s9 + $0x2f0] sm:$0xff] %v691_v30  ;;  %694 = vst [vmem:[%s4053_s9 + $0x2f8] sm:$0xff] %v693_v31  ;;  %v697_v33 = vld [vmem:[%s4048_s7 + $0x608] sm:$0xff]  ;;  %v699_v34 = vld [vmem:[%s4048_s7 + $0x610] sm:$0xff] }
  0x55   : > { %696 = vst [vmem:[%s4053_s9 + $0x300] sm:$0xff] %v695_v32  ;;  %698 = vst [vmem:[%s4053_s9 + $0x308] sm:$0xff] %v697_v33  ;;  %v701_v35 = vld [vmem:[%s4048_s7 + $0x618] sm:$0xff]  ;;  %v703_v36 = vld [vmem:[%s4048_s7 + $0x620] sm:$0xff] }
  0x56   : > { %700 = vst [vmem:[%s4053_s9 + $0x310] sm:$0xff] %v699_v34  ;;  %v705_v37 = vld [vmem:[%s4048_s7 + $0x628] sm:$0xff]  ;;  %702 = vst [vmem:[%s4053_s9 + $0x318] sm:$0xff] %v701_v35  ;;  %v707_v38 = vld [vmem:[%s4048_s7 + $0x630] sm:$0xff] }
  0x57   : > { %704 = vst [vmem:[%s4053_s9 + $0x320] sm:$0xff] %v703_v36  ;;  %706 = vst [vmem:[%s4053_s9 + $0x328] sm:$0xff] %v705_v37  ;;  %v709_v39 = vld [vmem:[%s4048_s7 + $0x638] sm:$0xff]  ;;  %v711_v40 = vld [vmem:[%s4048_s7 + $0x640] sm:$0xff] }
  0x58   : > { %708 = vst [vmem:[%s4053_s9 + $0x330] sm:$0xff] %v707_v38  ;;  %710 = vst [vmem:[%s4053_s9 + $0x338] sm:$0xff] %v709_v39  ;;  %v713_v41 = vld [vmem:[%s4048_s7 + $0x648] sm:$0xff]  ;;  %v715_v42 = vld [vmem:[%s4048_s7 + $0x650] sm:$0xff] }
  0x59   : > { %712 = vst [vmem:[%s4053_s9 + $0x340] sm:$0xff] %v711_v40  ;;  %v717_v43 = vld [vmem:[%s4048_s7 + $0x658] sm:$0xff]  ;;  %714 = vst [vmem:[%s4053_s9 + $0x348] sm:$0xff] %v713_v41  ;;  %v719_v44 = vld [vmem:[%s4048_s7 + $0x660] sm:$0xff] }
  0x5a   : > { %716 = vst [vmem:[%s4053_s9 + $0x350] sm:$0xff] %v715_v42  ;;  %718 = vst [vmem:[%s4053_s9 + $0x358] sm:$0xff] %v717_v43  ;;  %v721_v45 = vld [vmem:[%s4048_s7 + $0x668] sm:$0xff]  ;;  %v723_v46 = vld [vmem:[%s4048_s7 + $0x670] sm:$0xff] }
  0x5b   : > { %720 = vst [vmem:[%s4053_s9 + $0x360] sm:$0xff] %v719_v44  ;;  %722 = vst [vmem:[%s4053_s9 + $0x368] sm:$0xff] %v721_v45  ;;  %v725_v47 = vld [vmem:[%s4048_s7 + $0x678] sm:$0xff]  ;;  %v727_v48 = vld [vmem:[%s4048_s7 + $0x700] sm:$0xff] }
  0x5c   : > { %724 = vst [vmem:[%s4053_s9 + $0x370] sm:$0xff] %v723_v46  ;;  %v729_v49 = vld [vmem:[%s4048_s7 + $0x708] sm:$0xff]  ;;  %726 = vst [vmem:[%s4053_s9 + $0x378] sm:$0xff] %v725_v47  ;;  %v731_v50 = vld [vmem:[%s4048_s7 + $0x710] sm:$0xff] }
  0x5d   : > { %728 = vst [vmem:[%s4053_s9 + $0x380] sm:$0xff] %v727_v48  ;;  %730 = vst [vmem:[%s4053_s9 + $0x388] sm:$0xff] %v729_v49  ;;  %v733_v51 = vld [vmem:[%s4048_s7 + $0x718] sm:$0xff]  ;;  %v735_v52 = vld [vmem:[%s4048_s7 + $0x720] sm:$0xff] }
  0x5e   : > { %732 = vst [vmem:[%s4053_s9 + $0x390] sm:$0xff] %v731_v50  ;;  %734 = vst [vmem:[%s4053_s9 + $0x398] sm:$0xff] %v733_v51  ;;  %v737_v53 = vld [vmem:[%s4048_s7 + $0x728] sm:$0xff]  ;;  %v739_v54 = vld [vmem:[%s4048_s7 + $0x730] sm:$0xff] }
  0x5f   : > { %736 = vst [vmem:[%s4053_s9 + $0x3a0] sm:$0xff] %v735_v52  ;;  %v741_v55 = vld [vmem:[%s4048_s7 + $0x738] sm:$0xff]  ;;  %738 = vst [vmem:[%s4053_s9 + $0x3a8] sm:$0xff] %v737_v53  ;;  %v743_v56 = vld [vmem:[%s4048_s7 + $0x740] sm:$0xff] }
  0x60   : > { %740 = vst [vmem:[%s4053_s9 + $0x3b0] sm:$0xff] %v739_v54  ;;  %742 = vst [vmem:[%s4053_s9 + $0x3b8] sm:$0xff] %v741_v55  ;;  %v745_v57 = vld [vmem:[%s4048_s7 + $0x748] sm:$0xff]  ;;  %v747_v58 = vld [vmem:[%s4048_s7 + $0x750] sm:$0xff] }
  0x61   : > { %744 = vst [vmem:[%s4053_s9 + $0x3c0] sm:$0xff] %v743_v56  ;;  %746 = vst [vmem:[%s4053_s9 + $0x3c8] sm:$0xff] %v745_v57  ;;  %v749_v59 = vld [vmem:[%s4048_s7 + $0x758] sm:$0xff]  ;;  %v751_v60 = vld [vmem:[%s4048_s7 + $0x760] sm:$0xff] }
  0x62   : > { %748 = vst [vmem:[%s4053_s9 + $0x3d0] sm:$0xff] %v747_v58  ;;  %v753_v61 = vld [vmem:[%s4048_s7 + $0x768] sm:$0xff]  ;;  %750 = vst [vmem:[%s4053_s9 + $0x3d8] sm:$0xff] %v749_v59  ;;  %v755_v62 = vld [vmem:[%s4048_s7 + $0x770] sm:$0xff] }
  0x63   : > { %752 = vst [vmem:[%s4053_s9 + $0x3e0] sm:$0xff] %v751_v60  ;;  %754 = vst [vmem:[%s4053_s9 + $0x3e8] sm:$0xff] %v753_v61  ;;  %v757_v63 = vld [vmem:[%s4048_s7 + $0x778] sm:$0xff] }
  0x64   : > { %756 = vst [vmem:[%s4053_s9 + $0x3f0] sm:$0xff] %v755_v62  ;;  %758 = vst [vmem:[%s4053_s9 + $0x3f8] sm:$0xff] %v757_v63 }
  0x65 PF: > { %p2617_p0 = scmp.ge.s32.totalorder %s3915_s27, 1  ;;  %p771_p1 = scmp.lt.s32.totalorder %s3915_s27, 5 }
  0x67   : > { %p772_p2 = pnand %p2617_p0, %p771_p1 }
  0x68   : > { %s778_s6 = sand.u32 (!%p772_p2), 1, %s3891_s21   ;;  %p825_p3 = scmp.lt.s32.totalorder (!%p772_p2), %s3903_s24, 1  ;;  %vm962_vm0 = vcmask (!%p772_p2), 523264   ;;  %v4315_v0 = vld [vmem:[%s5059_s2] sm:$0xff] (!%p772_p2)  ;;  %v3917_v2 = vmov (!%p772_p2), 0   ;;  %vm2432_vm2 = vcmask (!%p772_p2), 1041409  }
  0x69   : > { %775 = sbr.rel (%p772_p2) target bundleno = 968 (0x3c8), region = 74  ;;  %s2618_s29 = sshll.u32 (!%p772_p2), %s778_s6, 10  ;;  %2989 = vmatprep.mubr.msk.f32.mxu0 (!%p772_p2), %vm962_vm0, %v4315_v0  ;;  %3027 = vmatprep.mubr.msk.f32.mxu1 (!%p772_p2), %vm962_vm0, %v4315_v0  ;;  %vm4323_vm1 = vmpackc.low (!%p772_p2), %vm962_vm0, %vm962_vm0  ;;  %vm2434_vm3 = vcmask (!%p772_p2), 1042434   ;;  %vm2436_vm4 = vcmask (!%p772_p2), 1043459   ;;  %vm2438_vm5 = vcmask (!%p772_p2), 1044484   ;;  %vm2440_vm6 = vcmask (!%p772_p2), 1045509  }
  0x6a   : > { %3734 = vset.pattern.permute.xlu1 (!%p772_p2), %v3917_v2  ;;  %3733 = vset.pattern.permute.xlu0 (!%p772_p2), %v3917_v2  ;;  %s2620_s21 = sshll.u32 (!%p772_p2), %s3903_s24, 3  ;;  %s4329_s12 = scalar_lea.vmem (!%p772_p2), [#allocation2], %s2618_s29  ;;  %vm2442_vm7 = vcmask (!%p772_p2), 1046534   ;;  %vm2444_vm8 = vcmask (!%p772_p2), 1047559  }
  0x6b   : > { %v834_v3 = vld [vmem:[%s4329_s12] sm:$0xff] (!%p772_p2)  ;;  %v835_v4 = vld [vmem:[%s4329_s12 + $0x8] sm:$0xff] (!%p772_p2)  ;;  %v836_v8 = vld [vmem:[%s4329_s12 + $0x10] sm:$0xff] (!%p772_p2)  ;;  %p817_p4 = scmp.lt.s32.totalorder (!%p772_p2), %s2620_s21, 15  ;;  %p2787_p5 = scmp.ne.s32.totalorder (!%p772_p2), %s3899_s23, 1 }
  0x6c   : > { %v850_v5 = vld [vmem:[%s4329_s12 + $0x80] sm:$0xff] (!%p772_p2)  ;;  %v3261_v6 = vpack.c.bf16 (!%p772_p2), %v835_v4, %v834_v3  ;;  %v851_v7 = vld [vmem:[%s4329_s12 + $0x88] sm:$0xff] (!%p772_p2)  ;;  %v837_v9 = vld [vmem:[%s4329_s12 + $0x18] sm:$0xff] (!%p772_p2) }
  0x6d   : > { %v3309_v10 = vpack.c.bf16 (!%p772_p2), %v851_v7, %v850_v5  ;;  %v3267_v11 = vpack.c.bf16 (!%p772_p2), %v837_v9, %v836_v8  ;;  %v852_v12 = vld [vmem:[%s4329_s12 + $0x90] sm:$0xff] (!%p772_p2)  ;;  %v853_v13 = vld [vmem:[%s4329_s12 + $0x98] sm:$0xff] (!%p772_p2)  ;;  %v838_v15 = vld [vmem:[%s4329_s12 + $0x20] sm:$0xff] (!%p772_p2) }
  0x6e   : > { %3263 = vmatprep.subr.msk.bf16.mxu0 (!%p772_p2), %vm4323_vm1, %v3261_v6  ;;  %v3315_v14 = vpack.c.bf16 (!%p772_p2), %v853_v13, %v852_v12  ;;  %v839_v16 = vld [vmem:[%s4329_s12 + $0x28] sm:$0xff] (!%p772_p2)  ;;  %v854_v17 = vld [vmem:[%s4329_s12 + $0xa0] sm:$0xff] (!%p772_p2)  ;;  %v840_v21 = vld [vmem:[%s4329_s12 + $0x30] sm:$0xff] (!%p772_p2) }
  0x6f   : > { %3311 = vmatprep.subr.msk.bf16.mxu1 (!%p772_p2), %vm4323_vm1, %v3309_v10  ;;  %3266 = vmatpush3.bf16.xpose.msk.msra.mxu0 (!%p772_p2), %vm4323_vm1, %v3261_v6  ;;  %v855_v18 = vld [vmem:[%s4329_s12 + $0xa8] sm:$0xff] (!%p772_p2)  ;;  %v3273_v19 = vpack.c.bf16 (!%p772_p2), %v839_v16, %v838_v15  ;;  %v841_v22 = vld [vmem:[%s4329_s12 + $0x38] sm:$0xff] (!%p772_p2)  ;;  %v856_v23 = vld [vmem:[%s4329_s12 + $0xb0] sm:$0xff] (!%p772_p2) }
  0x70   : > { %s826_s8 = scalar_select %p825_p3, %s3903_s24, 1  ;;  %3314 = vmatpush3.bf16.xpose.msk.msra.mxu1 %vm4323_vm1, %v3309_v10  ;;  %3269 = vmatprep.subr.msk.bf16.mxu0 %vm4323_vm1, %v3267_v11  ;;  %v3321_v20 = vpack.c.bf16 %v855_v18, %v854_v17  ;;  %v857_v24 = vld [vmem:[%s4329_s12 + $0xb8] sm:$0xff]  ;;  %v3279_v25 = vpack.c.bf16 %v841_v22, %v840_v21  ;;  %v842_v31 = vld [vmem:[%s4329_s12 + $0x40] sm:$0xff]  ;;  %v843_v32 = vld [vmem:[%s4329_s12 + $0x48] sm:$0xff] }
  0x71   : > { %3317 = vmatprep.subr.msk.bf16.mxu1 %vm4323_vm1, %v3315_v14  ;;  %s5087_s21 = smov (!%p817_p4, %s2620_s21), 15  ;;  %v3327_v28 = vpack.c.bf16 %v857_v24, %v856_v23  ;;  %v858_v33 = vld [vmem:[%s4329_s12 + $0xc0] sm:$0xff]  ;;  %v859_v34 = vld [vmem:[%s4329_s12 + $0xc8] sm:$0xff]  ;;  %v3285_v37 = vpack.c.bf16 %v843_v32, %v842_v31  ;;  %v844_v41 = vld [vmem:[%s4329_s12 + $0x50] sm:$0xff] }
  0x72   : > { %s2795_s13 = sshll.u32 %s826_s8, 4  ;;  %s2794_s6 = sshll.u32 %s5087_s21, 5  ;;  %v3333_v38 = vpack.c.bf16 %v859_v34, %v858_v33  ;;  %v845_v42 = vld [vmem:[%s4329_s12 + $0x58] sm:$0xff]  ;;  %v860_v43 = vld [vmem:[%s4329_s12 + $0xd0] sm:$0xff]  ;;  %v846_v51 = vld [vmem:[%s4329_s12 + $0x60] sm:$0xff] }
  0x73   : > { %s4342_s9 = scalar_lea.vmem %s5061_s4, %s2795_s13  ;;  %s4373_s29 = scalar_lea.vmem %s5057_s0, %s2794_s6  ;;  %v861_v44 = vld [vmem:[%s4329_s12 + $0xd8] sm:$0xff]  ;;  %v3291_v47 = vpack.c.bf16 %v845_v42, %v844_v41  ;;  %v847_v52 = vld [vmem:[%s4329_s12 + $0x68] sm:$0xff]  ;;  %v862_v53 = vld [vmem:[%s4329_s12 + $0xe0] sm:$0xff] }
  0x74   : > { %v2041_v26 = vld [vmem:[%s4373_s29 + $0x10] sm:$0xff]  ;;  %v2039_v27 = vld [vmem:[%s4373_s29] sm:$0xff]  ;;  %v2042_v29 = vld [vmem:[%s4373_s29 + $0x18] sm:$0xff]  ;;  %v3339_v48 = vpack.c.bf16 %v861_v44, %v860_v43  ;;  %v3297_v57 = vpack.c.bf16 %v847_v52, %v846_v51  ;;  %s2785_s6 = sshll.u32 %s3899_s23, 7 }
  0x75   : > { %2083 = vperm.xlu1 %3734, %v2041_v26   ;;  %2073 = vperm.xlu0 %3733, %v2039_v27   ;;  %v2040_v30 = vld [vmem:[%s4373_s29 + $0x8] sm:$0xff]  ;;  %v2043_v36 = vld [vmem:[%s4373_s29 + $0x20] sm:$0xff]  ;;  %v2046_v39 = vld [vmem:[%s4373_s29 + $0x38] sm:$0xff]  ;;  %s2447_s28 = sshra.s32 %s2785_s6, 7 }
  0x76   : > { %v2044_v35 = vld [vmem:[%s4373_s29 + $0x28] sm:$0xff]  ;;  %v2045_v40 = vld [vmem:[%s4373_s29 + $0x30] sm:$0xff]  ;;  %v2047_v46 = vld [vmem:[%s4373_s29 + $0x40] sm:$0xff]  ;;  %s2786_s21 = sshll.u32 %s2447_s28, 3 }
  0x77   : > { %3272 = vmatpush3.bf16.xpose.msk.msra.mxu0 %vm4323_vm1, %v3267_v11  ;;  %v2048_v45 = vld [vmem:[%s4373_s29 + $0x48] sm:$0xff]  ;;  %v2051_v49 = vld [vmem:[%s4373_s29 + $0x60] sm:$0xff]  ;;  %v2049_v50 = vld [vmem:[%s4373_s29 + $0x50] sm:$0xff] }
  0x78   : > { %3320 = vmatpush3.bf16.xpose.msk.msra.mxu1 %vm4323_vm1, %v3315_v14  ;;  %3275 = vmatprep.subr.msk.bf16.mxu0 %vm4323_vm1, %v3273_v19  ;;  %v863_v54 = vld [vmem:[%s4329_s12 + $0xe8] sm:$0xff]  ;;  %v2055_v55 = vld [vmem:[%s4373_s29 + $0x80] sm:$0xff]  ;;  %v2053_v59 = vld [vmem:[%s4373_s29 + $0x70] sm:$0xff] }
  0x79   : > { %3323 = vmatprep.subr.msk.bf16.mxu1 %vm4323_vm1, %v3321_v20  ;;  %2088 = vperm.xlu1 %3734, %v2042_v29   ;;  %v2052_v56 = vld [vmem:[%s4373_s29 + $0x68] sm:$0xff]  ;;  %v3345_v58 = vpack.c.bf16 %v863_v54, %v862_v53  ;;  %v848_v61 = vld [vmem:[%s4329_s12 + $0x70] sm:$0xff]  ;;  %v849_v62 = vld [vmem:[%s4329_s12 + $0x78] sm:$0xff] }
  0x7a   : > { %2078 = vperm.xlu0 %3733, %v2040_v30   ;;  %v2056_v60 = vld [vmem:[%s4373_s29 + $0x88] sm:$0xff]  ;;  %v864_v63 = vld [vmem:[%s4329_s12 + $0xf0] sm:$0xff]  ;;  %v865_v2 = vld [vmem:[%s4329_s12 + $0xf8] sm:$0xff]  ;;  %v3303_v5 = vpack.c.bf16 %v849_v62, %v848_v61 }
  0x7b   : > { %v2060_v3 = vld [vmem:[%s4373_s29 + $0xa8] sm:$0xff]  ;;  %v2059_v4 = vld [vmem:[%s4373_s29 + $0xa0] sm:$0xff]  ;;  %v3351_v6 = vpack.c.bf16 %v865_v2, %v864_v63  ;;  %v2057_v7 = vld [vmem:[%s4373_s29 + $0x90] sm:$0xff] }
  0x7c   : > { %v2050_v8 = vld [vmem:[%s4373_s29 + $0x58] sm:$0xff]  ;;  %v866_v9 = vld [vmem:[%s4329_s12 + $0x100] sm:$0xff]  ;;  %v867_v10 = vld [vmem:[%s4329_s12 + $0x108] sm:$0xff] }
  0x7d   : > { %2098 = vperm.xlu1 %3734, %v2044_v35   ;;  %v882_v11 = vld [vmem:[%s4329_s12 + $0x180] sm:$0xff]  ;;  %v883_v12 = vld [vmem:[%s4329_s12 + $0x188] sm:$0xff]  ;;  %v3357_v15 = vpack.c.bf16 %v867_v10, %v866_v9  ;;  %v2061_v17 = vld [vmem:[%s4373_s29 + $0xb0] sm:$0xff] }
  0x7e   : > { %2093 = vperm.xlu0 %3733, %v2043_v36   ;;  %v2064_v13 = vld [vmem:[%s4373_s29 + $0xc8] sm:$0xff]  ;;  %v2063_v14 = vld [vmem:[%s4373_s29 + $0xc0] sm:$0xff]  ;;  %v3405_v16 = vpack.c.bf16 %v883_v12, %v882_v11  ;;  %v2054_v18 = vld [vmem:[%s4373_s29 + $0x78] sm:$0xff] }
  0x7f   : > { %3278 = vmatpush3.bf16.xpose.msk.msra.mxu0 %vm4323_vm1, %v3273_v19  ;;  %v4470_v19 = vld [vmem:[%s5059_s2 + $0x8] sm:$0xff]  ;;  %v869_v21 = vld [vmem:[%s4329_s12 + $0x118] sm:$0xff]  ;;  %v884_v23 = vld [vmem:[%s4329_s12 + $0x190] sm:$0xff] }
  0x80   : > { %3326 = vmatpush3.bf16.xpose.msk.msra.mxu1 %vm4323_vm1, %v3321_v20  ;;  %3281 = vmatprep.subr.msk.bf16.mxu0 %vm4323_vm1, %v3279_v25  ;;  %v868_v20 = vld [vmem:[%s4329_s12 + $0x110] sm:$0xff]  ;;  %v2068_v22 = vld [vmem:[%s4373_s29 + $0xe8] sm:$0xff]  ;;  %v885_v24 = vld [vmem:[%s4329_s12 + $0x198] sm:$0xff] }
  0x81   : > { %3329 = vmatprep.subr.msk.bf16.mxu1 %vm4323_vm1, %v3327_v28  ;;  %2108 = vperm.xlu1 %3734, %v2046_v39   ;;  %v4483_v26 = vld [vmem:[%s5059_s2 + $0x10] sm:$0xff]  ;;  %v3363_v27 = vpack.c.bf16 %v869_v21, %v868_v20  ;;  %v4494_v29 = vld [vmem:[%s5059_s2 + $0x18] sm:$0xff]  ;;  %v870_v30 = vld [vmem:[%s4329_s12 + $0x120] sm:$0xff] }
  0x82   : > { %2103 = vperm.xlu0 %3733, %v2045_v40   ;;  %v871_v31 = vld [vmem:[%s4329_s12 + $0x128] sm:$0xff]  ;;  %v2065_v32 = vld [vmem:[%s4373_s29 + $0xd0] sm:$0xff]  ;;  %v886_v33 = vld [vmem:[%s4329_s12 + $0x1a0] sm:$0xff] }
  0x83   : > { %v887_v34 = vld [vmem:[%s4329_s12 + $0x1a8] sm:$0xff]  ;;  %v2058_v35 = vld [vmem:[%s4373_s29 + $0x98] sm:$0xff]  ;;  %v3369_v36 = vpack.c.bf16 %v871_v31, %v870_v30  ;;  %v872_v40 = vld [vmem:[%s4329_s12 + $0x130] sm:$0xff] }
  0x84   : > { %v2062_v39 = vld [vmem:[%s4373_s29 + $0xb8] sm:$0xff]  ;;  %v888_v42 = vld [vmem:[%s4329_s12 + $0x1b0] sm:$0xff]  ;;  %v875_v51 = vld [vmem:[%s4329_s12 + $0x148] sm:$0xff] }
  0x85   : > { %2118 = vperm.xlu1 %3734, %v2048_v45   ;;  %v873_v41 = vld [vmem:[%s4329_s12 + $0x138] sm:$0xff]  ;;  %v890_v52 = vld [vmem:[%s4329_s12 + $0x1c0] sm:$0xff]  ;;  %v891_v53 = vld [vmem:[%s4329_s12 + $0x1c8] sm:$0xff] }
  0x86   : > { %2113 = vperm.xlu0 %3733, %v2047_v46   ;;  %v889_v43 = vld [vmem:[%s4329_s12 + $0x1b8] sm:$0xff]  ;;  %v3375_v46 = vpack.c.bf16 %v873_v41, %v872_v40  ;;  %v878_v2 = vld [vmem:[%s4329_s12 + $0x160] sm:$0xff]  ;;  %v896_v10 = vld [vmem:[%s4329_s12 + $0x1f0] sm:$0xff] }
  0x87   : > { %3284 = vmatpush3.bf16.xpose.msk.msra.mxu0 %vm4323_vm1, %v3279_v25  ;;  %v2067_v25 = vld [vmem:[%s4373_s29 + $0xe0] sm:$0xff]  ;;  %v2070_v44 = vld [vmem:[%s4373_s29 + $0xf8] sm:$0xff]  ;;  %v900_v21 = vld [vmem:[%s4329_s12 + $0x210] sm:$0xff] }
  0x88   : > { %3332 = vmatpush3.bf16.xpose.msk.msra.mxu1 %vm4323_vm1, %v3327_v28  ;;  %3287 = vmatprep.subr.msk.bf16.mxu0 %vm4323_vm1, %v3285_v37  ;;  %v3411_v28 = vpack.c.bf16 %v885_v24, %v884_v23  ;;  %v2066_v45 = vld [vmem:[%s4373_s29 + $0xd8] sm:$0xff]  ;;  %v916_v23 = vld [vmem:[%s4329_s12 + $0x290] sm:$0xff]  ;;  %v903_v30 = vld [vmem:[%s4329_s12 + $0x228] sm:$0xff] }
  0x89   : > { %3335 = vmatprep.subr.msk.bf16.mxu1 %vm4323_vm1, %v3333_v38  ;;  %2133 = vperm.xlu1 %3734, %v2051_v49   ;;  %v2295_v49 = vld [vmem:[%s5060_s3] sm:$0xff]  ;;  %v2298_v54 = vld [vmem:[%s5060_s3 + $0x18] sm:$0xff] }
  0x8a   : > { %2123 = vperm.xlu0 %3733, %v2049_v50   ;;  %v874_v50 = vld [vmem:[%s4329_s12 + $0x140] sm:$0xff]  ;;  %v893_v61 = vld [vmem:[%s4329_s12 + $0x1d8] sm:$0xff] }
  0x8b   : > { %v881_v9 = vld [vmem:[%s4329_s12 + $0x178] sm:$0xff]  ;;  %v918_v31 = vld [vmem:[%s4329_s12 + $0x2a0] sm:$0xff] }
  0x8c   : > { %v897_v11 = vld [vmem:[%s4329_s12 + $0x1f8] sm:$0xff]  ;;  %v906_v41 = vld [vmem:[%s4329_s12 + $0x240] sm:$0xff] }
  0x8d   : > { %2153 = vperm.xlu1 %3734, %v2055_v55   ;;  %v2297_v55 = vld [vmem:[%s5060_s3 + $0x10] sm:$0xff]  ;;  %v917_v24 = vld [vmem:[%s4329_s12 + $0x298] sm:$0xff] }
  0x8e   : > { %2138 = vperm.xlu0 %3733, %v2052_v56   ;;  %v3381_v56 = vpack.c.bf16 %v875_v51, %v874_v50  ;;  %v925_v50 = vld [vmem:[%s4329_s12 + $0x2d8] sm:$0xff] }
  0x8f   : > { %3290 = vmatpush3.bf16.xpose.msk.msra.mxu0 %vm4323_vm1, %v3285_v37  ;;  %v3417_v37 = vpack.c.bf16 %v887_v34, %v886_v33 }
  0x90   : > { %3338 = vmatpush3.bf16.xpose.msk.msra.mxu1 %vm4323_vm1, %v3333_v38  ;;  %3293 = vmatprep.subr.msk.bf16.mxu0 %vm4323_vm1, %v3291_v47  ;;  %v2069_v38 = vld [vmem:[%s4373_s29 + $0xf0] sm:$0xff] }
  0x91   : > { %3341 = vmatprep.subr.msk.bf16.mxu1 %vm4323_vm1, %v3339_v48  ;;  %2143 = vperm.xlu1 %3734, %v2053_v59   ;;  %v877_v59 = vld [vmem:[%s4329_s12 + $0x158] sm:$0xff] }
  0x92   : > { %2158 = vperm.xlu0 %3733, %v2056_v60   ;;  %v892_v60 = vld [vmem:[%s4329_s12 + $0x1d0] sm:$0xff] }
  0x93   : > { %v3435_v63 = vpack.c.bf16 %v893_v61, %v892_v60  ;;  %v913_v60 = vld [vmem:[%s4329_s12 + $0x278] sm:$0xff]  ;;  %v928_v61 = vld [vmem:[%s4329_s12 + $0x2f0] sm:$0xff] }
  0x95   : > { %2178 = vperm.xlu1 %3734, %v2060_v3   ;;  %v879_v3 = vld [vmem:[%s4329_s12 + $0x168] sm:$0xff] }
  0x96   : > { %2173 = vperm.xlu0 %3733, %v2059_v4   ;;  %v894_v4 = vld [vmem:[%s4329_s12 + $0x1e0] sm:$0xff] }
  0x97   : > { %3296 = vmatpush3.bf16.xpose.msk.msra.mxu0 %vm4323_vm1, %v3291_v47  ;;  %v3423_v47 = vpack.c.bf16 %v889_v43, %v888_v42  ;;  %v907_v42 = vld [vmem:[%s4329_s12 + $0x248] sm:$0xff]  ;;  %v922_v43 = vld [vmem:[%s4329_s12 + $0x2c0] sm:$0xff] }
  0x98   : > { %3344 = vmatpush3.bf16.xpose.msk.msra.mxu1 %vm4323_vm1, %v3339_v48  ;;  %3299 = vmatprep.subr.msk.bf16.mxu0 %vm4323_vm1, %v3297_v57  ;;  %v2296_v48 = vld [vmem:[%s5060_s3 + $0x8] sm:$0xff] }
  0x99   : > { %3347 = vmatprep.subr.msk.bf16.mxu1 %vm4323_vm1, %v3345_v58  ;;  %2163 = vperm.xlu1 %3734, %v2057_v7  }
  0x9a   : > { %2128 = vperm.xlu0 %3733, %v2050_v8   ;;  %v880_v8 = vld [vmem:[%s4329_s12 + $0x170] sm:$0xff] }
  0x9b   : > { %v3399_v12 = vpack.c.bf16 %v881_v9, %v880_v8  ;;  %v932_v9 = vld [vmem:[%s4329_s12 + $0x310] sm:$0xff] }
  0x9d   : > { %2198 = vperm.xlu1 %3734, %v2064_v13   ;;  %v3447_v13 = vpack.c.bf16 %v897_v11, %v896_v10  ;;  %v933_v10 = vld [vmem:[%s4329_s12 + $0x318] sm:$0xff] }
  0x9e   : > { %2193 = vperm.xlu0 %3733, %v2063_v14   ;;  %v898_v14 = vld [vmem:[%s4329_s12 + $0x200] sm:$0xff] }
  0x9f   : > { %3302 = vmatpush3.bf16.xpose.msk.msra.mxu0 %vm4323_vm1, %v3297_v57  ;;  %v3429_v57 = vpack.c.bf16 %v891_v53, %v890_v52  ;;  %v910_v53 = vld [vmem:[%s4329_s12 + $0x260] sm:$0xff] }
  0xa0   : > { %3350 = vmatpush3.bf16.xpose.msk.msra.mxu1 %vm4323_vm1, %v3345_v58  ;;  %3305 = vmatprep.subr.msk.bf16.mxu0 %vm4323_vm1, %v3303_v5  ;;  %v876_v58 = vld [vmem:[%s4329_s12 + $0x150] sm:$0xff] }
  0xa1   : > { %3353 = vmatprep.subr.msk.bf16.mxu1 %vm4323_vm1, %v3351_v6  ;;  %2183 = vperm.xlu1 %3734, %v2061_v17   ;;  %v3387_v62 = vpack.c.bf16 %v877_v59, %v876_v58  ;;  %v915_v17 = vld [vmem:[%s4329_s12 + $0x288] sm:$0xff]  ;;  %v912_v59 = vld [vmem:[%s4329_s12 + $0x270] sm:$0xff] }
  0xa2   : > { %2148 = vperm.xlu0 %3733, %v2054_v18  }
  0xa5   : > { %2218 = vperm.xlu1 %3734, %v2068_v22   ;;  %v901_v22 = vld [vmem:[%s4329_s12 + $0x218] sm:$0xff] }
  0xa6   : > { %2213 = vperm.xlu0 %3733, %v2067_v25   ;;  %v3459_v25 = vpack.c.bf16 %v901_v22, %v900_v21  ;;  %v950_v22 = vld [vmem:[%s4329_s12 + $0x3a0] sm:$0xff] }
  0xa7   : > { %3308 = vmatpush3.bf16.xpose.msk.msra.mxu0 %vm4323_vm1, %v3303_v5  ;;  %v895_v5 = vld [vmem:[%s4329_s12 + $0x1e8] sm:$0xff] }
  0xa8   : > { %3356 = vmatpush3.bf16.xpose.msk.msra.mxu1 %vm4323_vm1, %v3351_v6  ;;  %3359 = vmatprep.subr.msk.bf16.mxu0 %vm4323_vm1, %v3357_v15  ;;  %v3393_v6 = vpack.c.bf16 %v879_v3, %v878_v2  ;;  %v3441_v7 = vpack.c.bf16 %v895_v5, %v894_v4  ;;  %v930_v3 = vld [vmem:[%s4329_s12 + $0x300] sm:$0xff]  ;;  %v931_v4 = vld [vmem:[%s4329_s12 + $0x308] sm:$0xff] }
  0xa9   : > { %3407 = vmatprep.subr.msk.bf16.mxu1 %vm4323_vm1, %v3405_v16  ;;  %2203 = vperm.xlu1 %3734, %v2065_v32   ;;  %v919_v32 = vld [vmem:[%s4329_s12 + $0x2a8] sm:$0xff]  ;;  %v946_v5 = vld [vmem:[%s4329_s12 + $0x380] sm:$0xff] }
  0xaa   : > { %2168 = vperm.xlu0 %3733, %v2058_v35   ;;  %v3513_v34 = vpack.c.bf16 %v919_v32, %v918_v31  ;;  %v904_v35 = vld [vmem:[%s4329_s12 + $0x230] sm:$0xff]  ;;  %v953_v32 = vld [vmem:[%s4329_s12 + $0x3b8] sm:$0xff] }
  0xab   : > { %v952_v31 = vld [vmem:[%s4329_s12 + $0x3b0] sm:$0xff] }
  0xad   : > { %2223 = vperm.xlu1 %3734, %v2069_v38   ;;  %v921_v38 = vld [vmem:[%s4329_s12 + $0x2b8] sm:$0xff] }
  0xae   : > { %2990 = vmatmul.mubr.msk.f32.vlgmr.msra.gmra.mrb[0].mxu0 %vm962_vm0, %v4470_v19  ;;  %2188 = vperm.xlu0 %3733, %v2062_v39  }
  0xaf   : > { %3028 = vmatmul.mubr.msk.f32.vlgmr.msra.gmra.mrb[0].mxu1 %vm962_vm0, %v4470_v19  ;;  %3362 = vmatpush3.bf16.xpose.msk.msra.mxu0 %vm4323_vm1, %v3357_v15  ;;  %v899_v15 = vld [vmem:[%s4329_s12 + $0x208] sm:$0xff] }
  0xb0   : > { %3410 = vmatpush3.bf16.xpose.msk.msra.mxu1 %vm4323_vm1, %v3405_v16  ;;  %2992 = vmatprep.mubr.msk.f32.mxu0 %vm962_vm0, %v4483_v26  ;;  %v914_v16 = vld [vmem:[%s4329_s12 + $0x280] sm:$0xff]  ;;  %v3453_v18 = vpack.c.bf16 %v899_v15, %v898_v14  ;;  %v3555_v15 = vpack.c.bf16 %v933_v10, %v932_v9 }
  0xb1   : > { %3030 = vmatprep.mubr.msk.f32.mxu1 %vm962_vm0, %v4483_v26  ;;  %3365 = vmatprep.subr.msk.bf16.mxu0 %vm4323_vm1, %v3363_v27  ;;  %v3501_v20 = vpack.c.bf16 %v915_v17, %v914_v16 }
  0xb2   : > { %2993 = vmatmul.mubr.msk.f32.gmra.mrb[2].mxu0 %vm962_vm0, %v4494_v29  ;;  %3413 = vmatprep.subr.msk.bf16.mxu1 %vm4323_vm1, %v3411_v28 }
  0xb3   : > { %3031 = vmatmul.mubr.msk.f32.gmra.mrb[2].mxu1 %vm962_vm0, %v4494_v29  ;;  %3065 = vmatprep.mubr.msk.f32.mxu0 %vm962_vm0, %v4315_v0 }
  0xb4   : > { %3103 = vmatprep.mubr.msk.f32.mxu1 %vm962_vm0, %v4315_v0  ;;  %2228 = vperm.xlu1 %3734, %v2070_v44   ;;  %v923_v44 = vld [vmem:[%s4329_s12 + $0x2c8] sm:$0xff] }
  0xb5   : > { %2208 = vperm.xlu0 %3733, %v2066_v45   ;;  %v3477_v45 = vpack.c.bf16 %v907_v42, %v906_v41 }
  0xb7   : > { %3368 = vmatpush3.bf16.xpose.msk.msra.mxu0 %vm4323_vm1, %v3363_v27  ;;  %v3507_v27 = vpack.c.bf16 %v917_v24, %v916_v23  ;;  %v951_v23 = vld [vmem:[%s4329_s12 + $0x3a8] sm:$0xff] }
  0xb8   : > { %3416 = vmatpush3.bf16.xpose.msk.msra.mxu1 %vm4323_vm1, %v3411_v28  ;;  %3371 = vmatprep.subr.msk.bf16.mxu0 %vm4323_vm1, %v3369_v36  ;;  %v902_v28 = vld [vmem:[%s4329_s12 + $0x220] sm:$0xff] }
  0xb9   : > { %3419 = vmatprep.subr.msk.bf16.mxu1 %vm4323_vm1, %v3417_v37  ;;  %2306 = vperm.xlu1 %3734, %v2296_v48   ;;  %v3465_v33 = vpack.c.bf16 %v903_v30, %v902_v28  ;;  %v909_v48 = vld [vmem:[%s4329_s12 + $0x258] sm:$0xff] }
  0xba   : > { %2301 = vperm.xlu0 %3733, %v2295_v49   ;;  %v924_v49 = vld [vmem:[%s4329_s12 + $0x2d0] sm:$0xff]  ;;  %v937_v30 = vld [vmem:[%s4329_s12 + $0x338] sm:$0xff] }
  0xbb   : > { %v3531_v52 = vpack.c.bf16 %v925_v50, %v924_v49  ;;  %v956_v49 = vld [vmem:[%s4329_s12 + $0x3d0] sm:$0xff]  ;;  %v957_v50 = vld [vmem:[%s4329_s12 + $0x3d8] sm:$0xff] }
  0xbd   : > { %2316 = vperm.xlu1 %3734, %v2298_v54   ;;  %v911_v54 = vld [vmem:[%s4329_s12 + $0x268] sm:$0xff] }
  0xbe   : > { %2311 = vperm.xlu0 %3733, %v2297_v55   ;;  %v926_v55 = vld [vmem:[%s4329_s12 + $0x2e0] sm:$0xff] }
  0xbf   : > { %3374 = vmatpush3.bf16.xpose.msk.msra.mxu0 %vm4323_vm1, %v3369_v36  ;;  %v905_v36 = vld [vmem:[%s4329_s12 + $0x238] sm:$0xff] }
  0xc0   : > { %3422 = vmatpush3.bf16.xpose.msk.msra.mxu1 %vm4323_vm1, %v3417_v37  ;;  %3377 = vmatprep.subr.msk.bf16.mxu0 %vm4323_vm1, %v3375_v46  ;;  %v920_v37 = vld [vmem:[%s4329_s12 + $0x2b0] sm:$0xff]  ;;  %v3471_v39 = vpack.c.bf16 %v905_v36, %v904_v35  ;;  %v3615_v35 = vpack.c.bf16 %v953_v32, %v952_v31 }
  0xc1   : > { %3425 = vmatprep.subr.msk.bf16.mxu1 %vm4323_vm1, %v3423_v47  ;;  %v3519_v40 = vpack.c.bf16 %v921_v38, %v920_v37  ;;  %v938_v37 = vld [vmem:[%s4329_s12 + $0x340] sm:$0xff]  ;;  %v939_v38 = vld [vmem:[%s4329_s12 + $0x348] sm:$0xff] }
  0xc7   : > { %3380 = vmatpush3.bf16.xpose.msk.msra.mxu0 %vm4323_vm1, %v3375_v46  ;;  %v3525_v46 = vpack.c.bf16 %v923_v44, %v922_v43  ;;  %v3573_v43 = vpack.c.bf16 %v939_v38, %v938_v37 }
  0xc8   : > { %3428 = vmatpush3.bf16.xpose.msk.msra.mxu1 %vm4323_vm1, %v3423_v47  ;;  %3383 = vmatprep.subr.msk.bf16.mxu0 %vm4323_vm1, %v3381_v56  ;;  %v908_v47 = vld [vmem:[%s4329_s12 + $0x250] sm:$0xff] }
  0xc9   : > { %3431 = vmatprep.subr.msk.bf16.mxu1 %vm4323_vm1, %v3429_v57  ;;  %v3483_v51 = vpack.c.bf16 %v909_v48, %v908_v47  ;;  %v941_v47 = vld [vmem:[%s4329_s12 + $0x358] sm:$0xff] }
  0xcf   : > { %3386 = vmatpush3.bf16.xpose.msk.msra.mxu0 %vm4323_vm1, %v3381_v56  ;;  %v927_v56 = vld [vmem:[%s4329_s12 + $0x2e8] sm:$0xff] }
  0xd0   : > { %3434 = vmatpush3.bf16.xpose.msk.msra.mxu1 %vm4323_vm1, %v3429_v57  ;;  %3389 = vmatprep.subr.msk.bf16.mxu0 %vm4323_vm1, %v3387_v62  ;;  %v3489_v57 = vpack.c.bf16 %v911_v54, %v910_v53  ;;  %v3537_v58 = vpack.c.bf16 %v927_v56, %v926_v55  ;;  %v942_v55 = vld [vmem:[%s4329_s12 + $0x360] sm:$0xff]  ;;  %v943_v56 = vld [vmem:[%s4329_s12 + $0x368] sm:$0xff] }
  0xd1   : > { %3437 = vmatprep.subr.msk.bf16.mxu1 %vm4323_vm1, %v3435_v63 }
  0xd7   : > { %3392 = vmatpush3.bf16.xpose.msk.msra.mxu0 %vm4323_vm1, %v3387_v62  ;;  %v929_v62 = vld [vmem:[%s4329_s12 + $0x2f8] sm:$0xff] }
  0xd8   : > { %3440 = vmatpush3.bf16.xpose.msk.msra.mxu1 %vm4323_vm1, %v3435_v63  ;;  %3395 = vmatprep.subr.msk.bf16.mxu0 %vm4323_vm1, %v3393_v6  ;;  %v3495_v63 = vpack.c.bf16 %v913_v60, %v912_v59  ;;  %v3543_v2 = vpack.c.bf16 %v929_v62, %v928_v61  ;;  %v3585_v59 = vpack.c.bf16 %v943_v56, %v942_v55 }
  0xd9   : > { %3443 = vmatprep.subr.msk.bf16.mxu1 %vm4323_vm1, %v3441_v7 }
  0xdf   : > { %3398 = vmatpush3.bf16.xpose.msk.msra.mxu0 %vm4323_vm1, %v3393_v6  ;;  %v947_v6 = vld [vmem:[%s4329_s12 + $0x388] sm:$0xff] }
  0xe0   : > { %3446 = vmatpush3.bf16.xpose.msk.msra.mxu1 %vm4323_vm1, %v3441_v7  ;;  %3401 = vmatprep.subr.msk.bf16.mxu0 %vm4323_vm1, %v3399_v12  ;;  %v3549_v7 = vpack.c.bf16 %v931_v4, %v930_v3  ;;  %v3597_v8 = vpack.c.bf16 %v947_v6, %v946_v5  ;;  %v960_v3 = vld [vmem:[%s4329_s12 + $0x3f0] sm:$0xff]  ;;  %v961_v4 = vld [vmem:[%s4329_s12 + $0x3f8] sm:$0xff] }
  0xe1   : > { %3449 = vmatprep.subr.msk.bf16.mxu1 %vm4323_vm1, %v3447_v13 }
  0xe7   : > { %3404 = vmatpush3.bf16.xpose.msk.msra.mxu0 %vm4323_vm1, %v3399_v12  ;;  %v948_v12 = vld [vmem:[%s4329_s12 + $0x390] sm:$0xff] }
  0xe8   : > { %3452 = vmatpush3.bf16.xpose.msk.msra.mxu1 %vm4323_vm1, %v3447_v13  ;;  %3455 = vmatprep.subr.msk.bf16.mxu0 %vm4323_vm1, %v3453_v18  ;;  %v949_v13 = vld [vmem:[%s4329_s12 + $0x398] sm:$0xff] }
  0xe9   : > { %3503 = vmatprep.subr.msk.bf16.mxu1 %vm4323_vm1, %v3501_v20  ;;  %v3603_v16 = vpack.c.bf16 %v949_v13, %v948_v12 }
  0xee   : > { %3066 = vmatmul.mubr.msk.f32.vlgmr.msra.gmra.mrb[4].mxu0 %vm962_vm0, %v4470_v19 }
  0xef   : > { %3104 = vmatmul.mubr.msk.f32.vlgmr.msra.gmra.mrb[4].mxu1 %vm962_vm0, %v4470_v19  ;;  %3458 = vmatpush3.bf16.xpose.msk.msra.mxu0 %vm4323_vm1, %v3453_v18  ;;  %v934_v18 = vld [vmem:[%s4329_s12 + $0x320] sm:$0xff] }
  0xf0   : > { %3506 = vmatpush3.bf16.xpose.msk.msra.mxu1 %vm4323_vm1, %v3501_v20  ;;  %3068 = vmatprep.mubr.msk.f32.mxu0 %vm962_vm0, %v4483_v26  ;;  %v935_v20 = vld [vmem:[%s4329_s12 + $0x328] sm:$0xff] }
  0xf1   : > { %3106 = vmatprep.mubr.msk.f32.mxu1 %vm962_vm0, %v4483_v26  ;;  %3461 = vmatprep.subr.msk.bf16.mxu0 %vm4323_vm1, %v3459_v25  ;;  %v3561_v24 = vpack.c.bf16 %v935_v20, %v934_v18 }
  0xf2   : > { %3069 = vmatmul.mubr.msk.f32.gmra.mrb[6].mxu0 %vm962_vm0, %v4494_v29  ;;  %3509 = vmatprep.subr.msk.bf16.mxu1 %vm4323_vm1, %v3507_v27 }
  0xf3   : > { %3107 = vmatmul.mubr.msk.f32.gmra.mrb[6].mxu1 %vm962_vm0, %v4494_v29  ;;  %3141 = vmatprep.mubr.msk.f32.mxu0 %vm962_vm0, %v4315_v0 }
  0xf4   : > { %3179 = vmatprep.mubr.msk.f32.mxu1 %vm962_vm0, %v4315_v0  ;;  %v4730_v11 = vpop.permute.xlu1 %2083  ;;  %v4734_v14 = vpop.permute.xlu0 %2073 }
  0xf7   : > { %3464 = vmatpush3.bf16.xpose.msk.msra.mxu0 %vm4323_vm1, %v3459_v25  ;;  %v3609_v25 = vpack.c.bf16 %v951_v23, %v950_v22 }
  0xf8   : > { %3512 = vmatpush3.bf16.xpose.msk.msra.mxu1 %vm4323_vm1, %v3507_v27  ;;  %3467 = vmatprep.subr.msk.bf16.mxu0 %vm4323_vm1, %v3465_v33  ;;  %v4746_v17 = vpop.permute.xlu1 %2088 }
  0xf9   : > { %3515 = vmatprep.subr.msk.bf16.mxu1 %vm4323_vm1, %v3513_v34  ;;  %v4754_v21 = vpop.permute.xlu0 %2078 }
  0xfc   : > { %v4768_v27 = vpop.permute.xlu1 %2098 }
  0xfd   : > { %v4772_v28 = vpop.permute.xlu0 %2093 }
  0xff   : > { %3470 = vmatpush3.bf16.xpose.msk.msra.mxu0 %vm4323_vm1, %v3465_v33 }
 0x100   : > { %3518 = vmatpush3.bf16.xpose.msk.msra.mxu1 %vm4323_vm1, %v3513_v34  ;;  %3473 = vmatprep.subr.msk.bf16.mxu0 %vm4323_vm1, %v3471_v39  ;;  %v4784_v34 = vpop.permute.xlu1 %2108 }
 0x101   : > { %3521 = vmatprep.subr.msk.bf16.mxu1 %vm4323_vm1, %v3519_v40  ;;  %v4786_v36 = vpop.permute.xlu0 %2103 }
 0x104   : > { %v4800_v41 = vpop.permute.xlu1 %2118 }
 0x105   : > { %v4802_v42 = vpop.permute.xlu0 %2113 }
 0x107   : > { %3476 = vmatpush3.bf16.xpose.msk.msra.mxu0 %vm4323_vm1, %v3471_v39  ;;  %v954_v39 = vld [vmem:[%s4329_s12 + $0x3c0] sm:$0xff] }
 0x108   : > { %3524 = vmatpush3.bf16.xpose.msk.msra.mxu1 %vm4323_vm1, %v3519_v40  ;;  %3479 = vmatprep.subr.msk.bf16.mxu0 %vm4323_vm1, %v3477_v45  ;;  %v955_v40 = vld [vmem:[%s4329_s12 + $0x3c8] sm:$0xff] }
 0x109   : > { %3527 = vmatprep.subr.msk.bf16.mxu1 %vm4323_vm1, %v3525_v46  ;;  %v3621_v44 = vpack.c.bf16 %v955_v40, %v954_v39  ;;  %v4816_v48 = vpop.permute.xlu0 %2123 }
 0x10d   : > { %v4824_v54 = vpop.permute.xlu0 %2138 }
 0x10f   : > { %3482 = vmatpush3.bf16.xpose.msk.msra.mxu0 %vm4323_vm1, %v3477_v45  ;;  %v4810_v45 = vpop.permute.xlu1 %2133 }
 0x110   : > { %3530 = vmatpush3.bf16.xpose.msk.msra.mxu1 %vm4323_vm1, %v3525_v46  ;;  %3485 = vmatprep.subr.msk.bf16.mxu0 %vm4323_vm1, %v3483_v51  ;;  %v940_v46 = vld [vmem:[%s4329_s12 + $0x350] sm:$0xff] }
 0x111   : > { %3533 = vmatprep.subr.msk.bf16.mxu1 %vm4323_vm1, %v3531_v52  ;;  %v4838_v62 = vpop.permute.xlu0 %2158 }
 0x113   : > { %v4820_v53 = vpop.permute.xlu1 %2153 }
 0x115   : > { %v4854_v6 = vpop.permute.xlu0 %2173 }
 0x117   : > { %3488 = vmatpush3.bf16.xpose.msk.msra.mxu0 %vm4323_vm1, %v3483_v51  ;;  %v3579_v51 = vpack.c.bf16 %v941_v47, %v940_v46  ;;  %v4836_v60 = vpop.permute.xlu1 %2143 }
 0x118   : > { %3536 = vmatpush3.bf16.xpose.msk.msra.mxu1 %vm4323_vm1, %v3531_v52  ;;  %3491 = vmatprep.subr.msk.bf16.mxu0 %vm4323_vm1, %v3489_v57  ;;  %v3627_v52 = vpack.c.bf16 %v957_v50, %v956_v49 }
 0x119   : > { %3539 = vmatprep.subr.msk.bf16.mxu1 %vm4323_vm1, %v3537_v58  ;;  %v4866_v10 = vpop.permute.xlu0 %2128 }
 0x11b   : > { %v4852_v5 = vpop.permute.xlu1 %2178 }
 0x11d   : > { %v4872_v13 = vpop.permute.xlu0 %2193 }
 0x11f   : > { %3494 = vmatpush3.bf16.xpose.msk.msra.mxu0 %vm4323_vm1, %v3489_v57  ;;  %v958_v57 = vld [vmem:[%s4329_s12 + $0x3e0] sm:$0xff]  ;;  %v4862_v9 = vpop.permute.xlu1 %2163 }
 0x120   : > { %3542 = vmatpush3.bf16.xpose.msk.msra.mxu1 %vm4323_vm1, %v3537_v58  ;;  %3497 = vmatprep.subr.msk.bf16.mxu0 %vm4323_vm1, %v3495_v63  ;;  %v959_v58 = vld [vmem:[%s4329_s12 + $0x3e8] sm:$0xff] }
 0x121   : > { %3545 = vmatprep.subr.msk.bf16.mxu1 %vm4323_vm1, %v3543_v2  ;;  %v3633_v61 = vpack.c.bf16 %v959_v58, %v958_v57 }
 0x123   : > { %v4868_v12 = vpop.permute.xlu1 %2198 }
 0x127   : > { %3500 = vmatpush3.bf16.xpose.msk.msra.mxu0 %vm4323_vm1, %v3495_v63  ;;  %v944_v63 = vld [vmem:[%s4329_s12 + $0x370] sm:$0xff] }
 0x128   : > { %3548 = vmatpush3.bf16.xpose.msk.msra.mxu1 %vm4323_vm1, %v3543_v2  ;;  %3551 = vmatprep.subr.msk.bf16.mxu0 %vm4323_vm1, %v3549_v7  ;;  %v945_v2 = vld [vmem:[%s4329_s12 + $0x378] sm:$0xff] }
 0x129   : > { %3599 = vmatprep.subr.msk.bf16.mxu1 %vm4323_vm1, %v3597_v8 }
 0x12e   : > { %3142 = vmatmul.mubr.msk.f32.vlgmr.msra.gmra.mrb[8].mxu0 %vm962_vm0, %v4470_v19 }
 0x12f   : > { %3180 = vmatmul.mubr.msk.f32.vlgmr.msra.gmra.mrb[8].mxu1 %vm962_vm0, %v4470_v19  ;;  %3554 = vmatpush3.bf16.xpose.msk.msra.mxu0 %vm4323_vm1, %v3549_v7  ;;  %v3591_v7 = vpack.c.bf16 %v945_v2, %v944_v63 }
 0x130   : > { %3602 = vmatpush3.bf16.xpose.msk.msra.mxu1 %vm4323_vm1, %v3597_v8  ;;  %3144 = vmatprep.mubr.msk.f32.mxu0 %vm962_vm0, %v4483_v26  ;;  %v3639_v8 = vpack.c.bf16 %v961_v4, %v960_v3 }
 0x131   : > { %3182 = vmatprep.mubr.msk.f32.mxu1 %vm962_vm0, %v4483_v26  ;;  %3557 = vmatprep.subr.msk.bf16.mxu0 %vm4323_vm1, %v3555_v15 }
 0x132   : > { %3145 = vmatmul.mubr.msk.f32.gmra.mrb[10].mxu0 %vm962_vm0, %v4494_v29  ;;  %3605 = vmatprep.subr.msk.bf16.mxu1 %vm4323_vm1, %v3603_v16 }
 0x133   : > { %3183 = vmatmul.mubr.msk.f32.gmra.mrb[10].mxu1 %vm962_vm0, %v4494_v29  ;;  %3217 = vmatprep.mubr.msk.f32.mxu0 %vm962_vm0, %v4315_v0 }
 0x134   : > { %3255 = vmatprep.mubr.msk.f32.mxu1 %vm962_vm0, %v4315_v0  ;;  %v936_v0 = vld [vmem:[%s4329_s12 + $0x330] sm:$0xff]  ;;  %s813_s12 = sand.u32 1, %s3883_s19  }
 0x135   : > { %v3567_v33 = vpack.c.bf16 %v937_v30, %v936_v0  ;;  %s2619_s17 = sshll.u32 %s813_s12, 4 }
 0x136   : > { %s4986_s8 = scalar_lea.vmem [#allocation3], %s2619_s17 }
 0x137   : > { %3560 = vmatpush3.bf16.xpose.msk.msra.mxu0 %vm4323_vm1, %v3555_v15  ;;  %v4876_v15 = vpop.permute.xlu1 %2183  ;;  %s2450_s29 = scalar_lea.vmem %s4986_s8, %s2786_s21 [#allocation3] }
 0x138   : > { %3608 = vmatpush3.bf16.xpose.msk.msra.mxu1 %vm4323_vm1, %v3603_v16  ;;  %3563 = vmatprep.subr.msk.bf16.mxu0 %vm4323_vm1, %v3561_v24  ;;  %v4878_v16 = vpop.permute.xlu0 %2148 }
 0x139   : > { %3611 = vmatprep.subr.msk.bf16.mxu1 %vm4323_vm1, %v3609_v25 }
 0x13b   : > { %v4890_v1 = vpop.permute.xlu1 %2218 }
 0x13c   : > { %v4894_v18 = vpop.permute.xlu0 %2213 }
 0x13f   : > { %3566 = vmatpush3.bf16.xpose.msk.msra.mxu0 %vm4323_vm1, %v3561_v24  ;;  %v4896_v20 = vpop.permute.xlu1 %2203 }
 0x140   : > { %3614 = vmatpush3.bf16.xpose.msk.msra.mxu1 %vm4323_vm1, %v3609_v25  ;;  %3569 = vmatprep.subr.msk.bf16.mxu0 %vm4323_vm1, %v3567_v33  ;;  %v4898_v22 = vpop.permute.xlu0 %2168 }
 0x141   : > { %3617 = vmatprep.subr.msk.bf16.mxu1 %vm4323_vm1, %v3615_v35 }
 0x144   : > { %v4902_v23 = vpop.permute.xlu0 %2188 }
 0x147   : > { %3572 = vmatpush3.bf16.xpose.msk.msra.mxu0 %vm4323_vm1, %v3567_v33 }
 0x148   : > { %3620 = vmatpush3.bf16.xpose.msk.msra.mxu1 %vm4323_vm1, %v3615_v35  ;;  %3575 = vmatprep.subr.msk.bf16.mxu0 %vm4323_vm1, %v3573_v43  ;;  %v4910_v37 = vpop.permute.xlu0 %2208 }
 0x149   : > { %3623 = vmatprep.subr.msk.bf16.mxu1 %vm4323_vm1, %v3621_v44 }
 0x14f   : > { %3578 = vmatpush3.bf16.xpose.msk.msra.mxu0 %vm4323_vm1, %v3573_v43 }
 0x150   : > { %3626 = vmatpush3.bf16.xpose.msk.msra.mxu1 %vm4323_vm1, %v3621_v44  ;;  %3581 = vmatprep.subr.msk.bf16.mxu0 %vm4323_vm1, %v3579_v51  ;;  %v4918_v44 = vpop.permute.xlu0 %2301 }
 0x151   : > { %3629 = vmatprep.subr.msk.bf16.mxu1 %vm4323_vm1, %v3627_v52 }
 0x157   : > { %3584 = vmatpush3.bf16.xpose.msk.msra.mxu0 %vm4323_vm1, %v3579_v51 }
 0x158   : > { %3632 = vmatpush3.bf16.xpose.msk.msra.mxu1 %vm4323_vm1, %v3627_v52  ;;  %3587 = vmatprep.subr.msk.bf16.mxu0 %vm4323_vm1, %v3585_v59  ;;  %v4924_v52 = vpop.permute.xlu0 %2311 }
 0x159   : > { %3635 = vmatprep.subr.msk.bf16.mxu1 %vm4323_vm1, %v3633_v61 }
 0x15f   : > { %3590 = vmatpush3.bf16.xpose.msk.msra.mxu0 %vm4323_vm1, %v3585_v59 }
 0x160   : > { %3638 = vmatpush3.bf16.xpose.msk.msra.mxu1 %vm4323_vm1, %v3633_v61  ;;  %3593 = vmatprep.subr.msk.bf16.mxu0 %vm4323_vm1, %v3591_v7 }
 0x161   : > { %3641 = vmatprep.subr.msk.bf16.mxu1 %vm4323_vm1, %v3639_v8 }
 0x167   : > { %3596 = vmatpush3.bf16.xpose.msk.msra.mxu0 %vm4323_vm1, %v3591_v7 }
 0x168   : > { %3644 = vmatpush3.bf16.xpose.msk.msra.mxu1 %vm4323_vm1, %v3639_v8 }
 0x16e   : > { %3218 = vmatmul.mubr.msk.f32.vlgmr.msra.gmra.mrb[12].mxu0 %vm962_vm0, %v4470_v19 }
 0x16f   : > { %3256 = vmatmul.mubr.msk.f32.vlgmr.msra.gmra.mrb[12].mxu1 %vm962_vm0, %v4470_v19  ;;  %3220 = vmatprep.mubr.msk.f32.mxu0 %vm962_vm0, %v4483_v26  ;;  %v4900_v19 = vpop.permute.xlu1 %2223 }
 0x170   : > { %3258 = vmatprep.mubr.msk.f32.mxu1 %vm962_vm0, %v4483_v26 }
 0x172   : > { %3221 = vmatmul.mubr.msk.f32.gmra.mrb[14].mxu0 %vm962_vm0, %v4494_v29 }
 0x173   : > { %3259 = vmatmul.mubr.msk.f32.gmra.mrb[14].mxu1 %vm962_vm0, %v4494_v29  ;;  %v4908_v33 = vpop.permute.xlu1 %2228 }
 0x177   : > { %v4916_v43 = vpop.permute.xlu1 %2306 }
 0x17b   : > { %v4926_v56 = vpop.permute.xlu1 %2316 }
 0x181   : > { %v2991_v24 = vpop.f32.mrb[0].mxu0 }
 0x182   : > { %v2232_v26 = vadd.f32 %v2991_v24, %v4754_v21  ;;  %v1089_v25 = vpop.f32.mrb[1].mxu0  ;;  %v3029_v0 = vpop.f32.mrb[0].mxu1 }
 0x183   : > { %v2231_v30 = vadd.f32 %v4734_v14, %v1089_v25  ;;  %v2236_v31 = vadd.f32 %v3029_v0, %v4768_v27  ;;  %v1222_v29 = vpop.f32.mrb[1].mxu1 }
 0x184   : > { %3735 = vtanh.f32 %v2232_v26  ;;  %v2235_v32 = vadd.f32 %v4772_v28, %v1222_v29 }
 0x185   : > { %3737 = vtanh.f32 %v2231_v30  ;;  %v2994_v35 = vpop.f32.mrb[2].mxu0 }
 0x186   : > { %3739 = vtanh.f32 %v2236_v31  ;;  %v2234_v38 = vadd.f32 %v2994_v35, %v4746_v17  ;;  %v3032_v21 = vpop.f32.mrb[2].mxu1  ;;  %v1099_v39 = vpop.f32.mrb[3].mxu0 }
 0x187   : > { %3741 = vtanh.f32 %v2235_v32  ;;  %v2238_v14 = vadd.f32 %v3032_v21, %v4784_v34  ;;  %v2233_v27 = vadd.f32 %v4730_v11, %v1099_v39  ;;  %v1232_v40 = vpop.f32.mrb[3].mxu1 }
 0x188   : > { %3743 = vtanh.f32 %v2234_v38  ;;  %v2237_v28 = vadd.f32 %v4786_v36, %v1232_v40 }
 0x189   : > { %3745 = vtanh.f32 %v2238_v14 }
 0x18a   : > { %3747 = vtanh.f32 %v2233_v27 }
 0x18b   : > { %3749 = vtanh.f32 %v2237_v28 }
 0x18e   : > { %v3736_v46 = vpop.eup %3735 }
 0x18f   : > { %v3738_v17 = vpop.eup %3737  ;;  %v2320_v47 = vmul.f32 %v3736_v46, %v4916_v43 }
 0x190   : > { %v3740_v49 = vpop.eup %3739  ;;  %v2319_v34 = vmul.f32 %v3738_v17, %v4918_v44 }
 0x191   : > { %v3742_v50 = vpop.eup %3741  ;;  %v2324_v11 = vmul.f32 %v3740_v49, %v4916_v43 }
 0x192   : > { %v3744_v51 = vpop.eup %3743  ;;  %v2323_v36 = vmul.f32 %v3742_v50, %v4918_v44  ;;  %v2351_v55 = vadd.f32 %v2320_v47, %v2319_v34 }
 0x193   : > { %v3746_v57 = vpop.eup %3745  ;;  %v2322_v2 = vmul.f32 %v3744_v51, %v4926_v56 }
 0x194   : > { %v3748_v58 = vpop.eup %3747  ;;  %v2360_v59 = vadd.f32 %v2324_v11, %v2323_v36  ;;  %v2326_v4 = vmul.f32 %v3746_v57, %v4926_v56 }
 0x195   : > { %v3750_v61 = vpop.eup %3749  ;;  %v2321_v63 = vmul.f32 %v3748_v58, %v4924_v52 }
 0x196   : > { %v2325_v3 = vmul.f32 %v3750_v61, %v4924_v52 }
 0x197   : > { %v2352_v7 = vadd.f32 %v2351_v55, %v2321_v63 }
 0x198   : > { %v2361_v8 = vadd.f32 %v2360_v59, %v2325_v3 }
 0x199   : > { %v2353_v24 = vadd.f32 %v2352_v7, %v2322_v2 }
 0x19a   : > { %v2362_v26 = vadd.f32 %v2361_v8, %v2326_v4 }
 0x19b   : > { %v2354_v25 = vrot.slane %v2353_v24, 4 }
 0x19c   : > { %v2363_v0 = vrot.slane %v2362_v26, 4 }
 0x19d   : > { %v2355_v30 = vadd.f32 %v2354_v25, %v2353_v24 }
 0x19e   : > { %v2364_v31 = vadd.f32 %v2363_v0, %v2362_v26 }
 0x19f   : > { %v2356_v29 = vrot.slane %v2355_v30, 2 }
 0x1a0   : > { %v2365_v32 = vrot.slane %v2364_v31, 2 }
 0x1a1   : > { %v2357_v35 = vadd.f32 %v2356_v29, %v2355_v30 }
 0x1a2   : > { %v2366_v38 = vadd.f32 %v2365_v32, %v2364_v31 }
 0x1a3   : > { %v2358_v21 = vrot.slane %v2357_v35, 1 }
 0x1a4   : > { %v2367_v39 = vrot.slane %v2366_v38, 1 }
 0x1a5   : > { %v2359_v14 = vadd.f32 %v2358_v21, %v2357_v35 }
 0x1a6   : > { %v2368_v27 = vadd.f32 %v2367_v39, %v2366_v38 }
 0x1a8   : > { %v2433_v40 = vsel %vm2432_vm2, %v2368_v27, %v2359_v14 }
 0x1c1   : > { %v3067_v28 = vpop.f32.mrb[4].mxu0 }
 0x1c2   : > { %v2240_v46 = vadd.f32 %v3067_v28, %v4800_v41  ;;  %v1355_v17 = vpop.f32.mrb[5].mxu0  ;;  %v3105_v47 = vpop.f32.mrb[4].mxu1 }
 0x1c3   : > { %v2239_v49 = vadd.f32 %v4802_v42, %v1355_v17  ;;  %v2244_v34 = vadd.f32 %v3105_v47, %v4824_v54  ;;  %v1488_v50 = vpop.f32.mrb[5].mxu1 }
 0x1c4   : > { %3751 = vtanh.f32 %v2240_v46  ;;  %v2243_v11 = vadd.f32 %v4810_v45, %v1488_v50 }
 0x1c5   : > { %3753 = vtanh.f32 %v2239_v49  ;;  %v3070_v51 = vpop.f32.mrb[6].mxu0 }
 0x1c6   : > { %3755 = vtanh.f32 %v2244_v34  ;;  %v2242_v36 = vadd.f32 %v3070_v51, %v4866_v10  ;;  %v3108_v55 = vpop.f32.mrb[6].mxu1  ;;  %v1365_v57 = vpop.f32.mrb[7].mxu0 }
 0x1c7   : > { %3757 = vtanh.f32 %v2243_v11  ;;  %v2246_v41 = vadd.f32 %v3108_v55, %v4878_v16  ;;  %v2241_v58 = vadd.f32 %v4816_v48, %v1365_v57  ;;  %v1498_v59 = vpop.f32.mrb[7].mxu1 }
 0x1c8   : > { %3759 = vtanh.f32 %v2242_v36  ;;  %v2245_v42 = vadd.f32 %v4836_v60, %v1498_v59 }
 0x1c9   : > { %3761 = vtanh.f32 %v2246_v41 }
 0x1ca   : > { %3763 = vtanh.f32 %v2241_v58 }
 0x1cb   : > { %3765 = vtanh.f32 %v2245_v42 }
 0x1ce   : > { %v3752_v45 = vpop.eup %3751 }
 0x1cf   : > { %v3754_v54 = vpop.eup %3753  ;;  %v2328_v61 = vmul.f32 %v3752_v45, %v4916_v43 }
 0x1d0   : > { %v3756_v63 = vpop.eup %3755  ;;  %v2327_v10 = vmul.f32 %v3754_v54, %v4918_v44 }
 0x1d1   : > { %v3758_v2 = vpop.eup %3757  ;;  %v2332_v3 = vmul.f32 %v3756_v63, %v4916_v43 }
 0x1d2   : > { %v3760_v16 = vpop.eup %3759  ;;  %v2369_v4 = vadd.f32 %v2328_v61, %v2327_v10  ;;  %v2331_v48 = vmul.f32 %v3758_v2, %v4918_v44 }
 0x1d3   : > { %v3762_v7 = vpop.eup %3761  ;;  %v2330_v26 = vmul.f32 %v3760_v16, %v4926_v56 }
 0x1d4   : > { %v3764_v8 = vpop.eup %3763  ;;  %v2378_v60 = vadd.f32 %v2332_v3, %v2331_v48  ;;  %v2334_v0 = vmul.f32 %v3762_v7, %v4926_v56 }
 0x1d5   : > { %v3766_v24 = vpop.eup %3765  ;;  %v2329_v25 = vmul.f32 %v3764_v8, %v4924_v52 }
 0x1d6   : > { %v2333_v30 = vmul.f32 %v3766_v24, %v4924_v52 }
 0x1d7   : > { %v2370_v31 = vadd.f32 %v2369_v4, %v2329_v25 }
 0x1d8   : > { %v2379_v29 = vadd.f32 %v2378_v60, %v2333_v30 }
 0x1d9   : > { %v2371_v32 = vadd.f32 %v2370_v31, %v2330_v26 }
 0x1da   : > { %v2380_v35 = vadd.f32 %v2379_v29, %v2334_v0 }
 0x1db   : > { %v2372_v38 = vrot.slane %v2371_v32, 4 }
 0x1dc   : > { %v2381_v21 = vrot.slane %v2380_v35, 4 }
 0x1dd   : > { %v2373_v39 = vadd.f32 %v2372_v38, %v2371_v32 }
 0x1de   : > { %v2382_v14 = vadd.f32 %v2381_v21, %v2380_v35 }
 0x1df   : > { %v2374_v27 = vrot.slane %v2373_v39, 2 }
 0x1e0   : > { %v2383_v28 = vrot.slane %v2382_v14, 2 }
 0x1e1   : > { %v2375_v46 = vadd.f32 %v2374_v27, %v2373_v39 }
 0x1e2   : > { %v2384_v17 = vadd.f32 %v2383_v28, %v2382_v14 }
 0x1e3   : > { %v2376_v47 = vrot.slane %v2375_v46, 1 }
 0x1e4   : > { %v2385_v49 = vrot.slane %v2384_v17, 1 }
 0x1e5   : > { %v2377_v34 = vadd.f32 %v2376_v47, %v2375_v46 }
 0x1e6   : > { %v2386_v50 = vadd.f32 %v2385_v49, %v2384_v17 }
 0x1e7   : > { %v2435_v11 = vsel %vm2434_vm3, %v2377_v34, %v2433_v40 }
 0x1e8   : > { %v2437_v51 = vsel %vm2436_vm4, %v2386_v50, %v2435_v11 }
 0x201   : > { %v3143_v36 = vpop.f32.mrb[8].mxu0 }
 0x202   : > { %v2248_v55 = vadd.f32 %v3143_v36, %v4838_v62  ;;  %v3181_v57 = vpop.f32.mrb[8].mxu1  ;;  %v1621_v41 = vpop.f32.mrb[9].mxu0 }
 0x203   : > { %v2252_v58 = vadd.f32 %v3181_v57, %v4852_v5  ;;  %v2247_v59 = vadd.f32 %v4820_v53, %v1621_v41  ;;  %v1754_v42 = vpop.f32.mrb[9].mxu1 }
 0x204   : > { %3767 = vtanh.f32 %v2248_v55  ;;  %v2251_v45 = vadd.f32 %v4854_v6, %v1754_v42 }
 0x205   : > { %3769 = vtanh.f32 %v2252_v58  ;;  %v3146_v54 = vpop.f32.mrb[10].mxu0 }
 0x206   : > { %3771 = vtanh.f32 %v2247_v59  ;;  %v2250_v61 = vadd.f32 %v3146_v54, %v4898_v22  ;;  %v3184_v40 = vpop.f32.mrb[10].mxu1  ;;  %v1631_v63 = vpop.f32.mrb[11].mxu0 }
 0x207   : > { %3773 = vtanh.f32 %v2251_v45  ;;  %v2254_v62 = vadd.f32 %v3184_v40, %v4902_v23  ;;  %v2249_v10 = vadd.f32 %v4862_v9, %v1631_v63  ;;  %v1764_v2 = vpop.f32.mrb[11].mxu1 }
 0x208   : > { %3775 = vtanh.f32 %v2250_v61  ;;  %v2253_v53 = vadd.f32 %v4876_v15, %v1764_v2 }
 0x209   : > { %3777 = vtanh.f32 %v2254_v62 }
 0x20a   : > { %3779 = vtanh.f32 %v2249_v10 }
 0x20b   : > { %3781 = vtanh.f32 %v2253_v53 }
 0x20e   : > { %v3768_v5 = vpop.eup %3767 }
 0x20f   : > { %v3770_v6 = vpop.eup %3769  ;;  %v2336_v3 = vmul.f32 %v3768_v5, %v4916_v43 }
 0x210   : > { %v3772_v16 = vpop.eup %3771  ;;  %v2340_v22 = vmul.f32 %v3770_v6, %v4916_v43 }
 0x211   : > { %v3774_v4 = vpop.eup %3773  ;;  %v2335_v48 = vmul.f32 %v3772_v16, %v4918_v44 }
 0x212   : > { %v3776_v23 = vpop.eup %3775  ;;  %v2339_v9 = vmul.f32 %v3774_v4, %v4918_v44 }
 0x213   : > { %v3778_v7 = vpop.eup %3777  ;;  %v2387_v8 = vadd.f32 %v2336_v3, %v2335_v48  ;;  %v2338_v0 = vmul.f32 %v3776_v23, %v4926_v56 }
 0x214   : > { %v3780_v60 = vpop.eup %3779  ;;  %v2396_v15 = vadd.f32 %v2340_v22, %v2339_v9  ;;  %v2342_v31 = vmul.f32 %v3778_v7, %v4926_v56 }
 0x215   : > { %v3782_v24 = vpop.eup %3781  ;;  %v2337_v26 = vmul.f32 %v3780_v60, %v4924_v52 }
 0x216   : > { %v2341_v25 = vmul.f32 %v3782_v24, %v4924_v52 }
 0x217   : > { %v2388_v30 = vadd.f32 %v2387_v8, %v2337_v26 }
 0x218   : > { %v2397_v29 = vadd.f32 %v2396_v15, %v2341_v25 }
 0x219   : > { %v2389_v32 = vadd.f32 %v2388_v30, %v2338_v0 }
 0x21a   : > { %v2398_v35 = vadd.f32 %v2397_v29, %v2342_v31 }
 0x21b   : > { %v2390_v38 = vrot.slane %v2389_v32, 4 }
 0x21c   : > { %v2399_v21 = vrot.slane %v2398_v35, 4 }
 0x21d   : > { %v2391_v39 = vadd.f32 %v2390_v38, %v2389_v32 }
 0x21e   : > { %v2400_v14 = vadd.f32 %v2399_v21, %v2398_v35 }
 0x21f   : > { %v2392_v27 = vrot.slane %v2391_v39, 2 }
 0x220   : > { %v2401_v28 = vrot.slane %v2400_v14, 2 }
 0x221   : > { %v2393_v46 = vadd.f32 %v2392_v27, %v2391_v39  ;;  %v2458_v27 = vld [vmem:[%s4342_s9] sm:$0xff] (!%p2787_p5) }
 0x222   : > { %v2402_v17 = vadd.f32 %v2401_v28, %v2400_v14  ;;  %v2459_v28 = vld [vmem:[%s4342_s9 + $0x8] sm:$0xff] (!%p2787_p5)  ;;  %vm2460_vm9 = vcmp.eq.f32.partialorder (!%p2787_p5), %v2458_v27, 0.0 }
 0x223   : > { %v2394_v47 = vrot.slane %v2393_v46, 1  ;;  %vm2461_vm10 = vcmp.eq.f32.partialorder (!%p2787_p5), %v2459_v28, 0.0 }
 0x224   : > { %v2403_v49 = vrot.slane %v2402_v17, 1 }
 0x225   : > { %v2395_v34 = vadd.f32 %v2394_v47, %v2393_v46 }
 0x226   : > { %v2404_v50 = vadd.f32 %v2403_v49, %v2402_v17 }
 0x227   : > { %v2439_v11 = vsel %vm2438_vm5, %v2395_v34, %v2437_v51 }
 0x228   : > { %v4964_v36 = vsel %vm2440_vm6, %v2404_v50, %v2439_v11 }
 0x241   : > { %v3219_v55 = vpop.f32.mrb[12].mxu0 }
 0x242   : > { %v2256_v57 = vadd.f32 %v3219_v55, %v4868_v12  ;;  %v3257_v41 = vpop.f32.mrb[12].mxu1  ;;  %v1887_v58 = vpop.f32.mrb[13].mxu0 }
 0x243   : > { %v2260_v59 = vadd.f32 %v3257_v41, %v4890_v1  ;;  %v2255_v42 = vadd.f32 %v4872_v13, %v1887_v58  ;;  %v2020_v45 = vpop.f32.mrb[13].mxu1 }
 0x244   : > { %3783 = vtanh.f32 %v2256_v57  ;;  %v2259_v54 = vadd.f32 %v4894_v18, %v2020_v45 }
 0x245   : > { %3785 = vtanh.f32 %v2260_v59  ;;  %v3222_v61 = vpop.f32.mrb[14].mxu0 }
 0x246   : > { %3787 = vtanh.f32 %v2255_v42  ;;  %v2258_v51 = vadd.f32 %v3222_v61, %v4910_v37  ;;  %v3260_v40 = vpop.f32.mrb[14].mxu1  ;;  %v1897_v63 = vpop.f32.mrb[15].mxu0 }
 0x247   : > { %3789 = vtanh.f32 %v2259_v54  ;;  %v2262_v12 = vadd.f32 %v3260_v40, %v4908_v33  ;;  %v2257_v62 = vadd.f32 %v4896_v20, %v1897_v63  ;;  %v2030_v10 = vpop.f32.mrb[15].mxu1 }
 0x248   : > { %3791 = vtanh.f32 %v2258_v51  ;;  %v2261_v13 = vadd.f32 %v4900_v19, %v2030_v10 }
 0x249   : > { %3793 = vtanh.f32 %v2262_v12 }
 0x24a   : > { %3795 = vtanh.f32 %v2257_v62 }
 0x24b   : > { %3797 = vtanh.f32 %v2261_v13 }
 0x24e   : > { %v3784_v1 = vpop.eup %3783 }
 0x24f   : > { %v3786_v18 = vpop.eup %3785  ;;  %v2344_v2 = vmul.f32 %v3784_v1, %v4916_v43 }
 0x250   : > { %v3788_v53 = vpop.eup %3787  ;;  %v2348_v37 = vmul.f32 %v3786_v18, %v4916_v43 }
 0x251   : > { %v3790_v5 = vpop.eup %3789  ;;  %v2343_v6 = vmul.f32 %v3788_v53, %v4918_v44 }
 0x252   : > { %v3792_v33 = vpop.eup %3791  ;;  %v2347_v20 = vmul.f32 %v3790_v5, %v4918_v44 }
 0x253   : > { %v3794_v3 = vpop.eup %3793  ;;  %v2405_v16 = vadd.f32 %v2344_v2, %v2343_v6  ;;  %v2346_v43 = vmul.f32 %v3792_v33, %v4926_v56 }
 0x254   : > { %v3796_v19 = vpop.eup %3795  ;;  %v2414_v22 = vadd.f32 %v2348_v37, %v2347_v20  ;;  %v2350_v7 = vmul.f32 %v3794_v3, %v4926_v56 }
 0x255   : > { %v3798_v4 = vpop.eup %3797  ;;  %v2345_v48 = vmul.f32 %v3796_v19, %v4924_v52 }
 0x256   : > { %v2349_v23 = vmul.f32 %v3798_v4, %v4924_v52 }
 0x257   : > { %v2406_v9 = vadd.f32 %v2405_v16, %v2345_v48 }
 0x258   : > { %v2415_v8 = vadd.f32 %v2414_v22, %v2349_v23 }
 0x259   : > { %v2407_v60 = vadd.f32 %v2406_v9, %v2346_v43 }
 0x25a   : > { %v2416_v44 = vadd.f32 %v2415_v8, %v2350_v7 }
 0x25b   : > { %v2408_v15 = vrot.slane %v2407_v60, 4 }
 0x25c   : > { %v2417_v24 = vrot.slane %v2416_v44, 4 }
 0x25d   : > { %v2409_v26 = vadd.f32 %v2408_v15, %v2407_v60 }
 0x25e   : > { %v2418_v25 = vadd.f32 %v2417_v24, %v2416_v44 }
 0x25f   : > { %v2410_v0 = vrot.slane %v2409_v26, 2 }
 0x260   : > { %v2419_v30 = vrot.slane %v2418_v25, 2 }
 0x261   : > { %v2411_v52 = vadd.f32 %v2410_v0, %v2409_v26 }
 0x262   : > { %v2420_v31 = vadd.f32 %v2419_v30, %v2418_v25 }
 0x263   : > { %v2412_v29 = vrot.slane %v2411_v52, 1  ;;  %2455 = sbr.rel (%p2787_p5) target bundleno = 944 (0x3b0), region = 82 }
 0x264   : > { %v2421_v56 = vrot.slane %v2420_v31, 1 }
 0x265   : > { %v2413_v32 = vadd.f32 %v2412_v29, %v2411_v52 }
 0x266   : > { %v2422_v35 = vadd.f32 %v2421_v56, %v2420_v31 }
 0x267   : > { %v2443_v38 = vsel %vm2442_vm7, %v2413_v32, %v4964_v36 }
 0x268   : > { %v2445_v21 = vsel %vm2444_vm8, %v2422_v35, %v2443_v38 }
 0x269   : > { %2451 = vst [vmem:[%s2450_s29] sm:$0xff] %v2445_v21 }
 0x270   : > { %v2456_v39 = vld [vmem:[%s4986_s8] sm:$0xff]  ;;  %v2457_v14 = vld [vmem:[%s4986_s8 + $0x8] sm:$0xff] }
 0x271   : > { %v2462_v46 = vsel %vm2460_vm9, -1e+09, %v2456_v39  ;;  %v2463_v17 = vsel %vm2461_vm10, -1e+09, %v2457_v14 }
 0x272   : > { %v2471_v47 = vmax.f32 %v2462_v46, %v2463_v17 }
 0x274   : > { %2472 = vmax.xlane.f32.xlu0 %v2471_v47 }
 0x301   : > { %v2473_v49 = vpop.xlane.xlu0 %2472 }
 0x302   : > { %v2474_v34 = vsub.f32 %v2462_v46, %v2473_v49  ;;  %v2475_v50 = vsub.f32 %v2463_v17, %v2473_v49 }
 0x304   : > { %v2476_v11 = vmul.f32 1.442695, %v2474_v34  ;;  %v2478_v36 = vmul.f32 1.442695, %v2475_v50 }
 0x306   : > { %3799 = vpow2.f32 %v2476_v11 }
 0x307   : > { %3801 = vpow2.f32 %v2478_v36 }
 0x310   : > { %v3800_v55 = vpop.eup %3799 }
 0x311   : > { %v3802_v57 = vpop.eup %3801 }
 0x312   : > { %v2480_v41 = vadd.f32 %v3802_v57, %v3800_v55 }
 0x314   : > { %2481 = vadd.xlane.f32.xlu0 %v2480_v41 }
 0x3a1   : > { %v2482_v58 = vpop.xlane.xlu0 %2481 }
 0x3a2   : > { %3803 = vrcp.f32 %v2482_v58 }
 0x3ac   : > { %v3804_v59 = vpop.eup %3803 }
 0x3ad   : > { %v2484_v42 = vmul.f32 %v3804_v59, %v3800_v55  ;;  %v2485_v45 = vmul.f32 %v3804_v59, %v3802_v57 }
 0x3af   : > { %2486 = vst [vmem:[%s4986_s8] sm:$0xff] %v2484_v42  ;;  %2487 = vst [vmem:[%s4986_s8 + $0x8] sm:$0xff] %v2485_v45 }
 0x3b0 PF: > { %s2796_s23 = sshll.u32 %s3903_s24, 8  ;;  %s2503_s7 = sshll.u32 %s4986_s8, 4  ;;  %s2504_s7 = int_to_ptr.vmem [resolvable:$true] %s2503_s7 }
 0x3b1   : > { %s5001_s10 = scalar_lea.hbm %s5062_s5, %s2796_s23  ;;  %s2489_s6 = scalar_lea.sflag [#allocation4], %s813_s12 }
 0x3b2   : > { %s3805_s17 = scalar_lea.vmem %s2504_s7, 256  ;;  %s3918_s28 = smov [#allocation3]  }
 0x3b3   : > { %p3806_p6 = scmp.ne.s32.totalorder %s2504_s7, %s3805_s17  ;;  %s3809_s21 = sshll.u32 %s3918_s28, 4  ;;  %s3810_s21 = int_to_ptr.vmem [resolvable:$false] %s3809_s21 }
 0x3b4   : > { %s3811_s29 = scalar_lea.vmem %s3810_s21, 512  ;;  %p3812_p10 = scmp.lt.s32.totalorder %s2504_s7, %s3810_s21 }
 0x3b5   : > { %p3807_p8 = pnand %p3806_p6, %p4021_p7  ;;  %p3813_p11 = scmp.lt.s32.totalorder %s3811_s29, %s3805_s17 }
 0x3b7   : > { %p3808_p9 = pneg %p3807_p8  ;;  %p3814_p13 = por %p3813_p11, %p3812_p10 }
 0x3b9   : > { %p3815_p0 = pnand %p3814_p13, %p3808_p9 }
 0x3bb   : > { %3818 = shalt.err (!%p3815_p0)
}
 0x3bc   : > { %s3819_s24 = scalar_lea.hbm %s5001_s10, 256  ;;  %s3823_s23 = scalar_lea.hbm %s5062_s5, 512 }
 0x3bd   : > { %p3820_p1 = scmp.ne.s32.totalorder %s5001_s10, %s3819_s24  ;;  %p3824_p4 = scmp.lt.u32.totalorder %s5001_s10, %s5062_s5 }
 0x3be   : > { %p3825_p5 = scmp.lt.u32.totalorder %s3823_s23, %s3819_s24  ;;  %p3827_p8 = scmp.lt.u32.totalorder %s3819_s24, %s5001_s10 }
 0x3bf   : > { %p3821_p2 = pnand %p3820_p1, %p4021_p7 }
 0x3c0   : > { %p3826_p6 = por %p3825_p5, %p3824_p4 }
 0x3c1   : > { %p3822_p3 = pneg %p3821_p2 }
 0x3c2   : > { %p3828_p9 = por %p3827_p8, %p3826_p6 }
 0x3c4   : > { %p3829_p10 = pnand %p3828_p9, %p3822_p3 }
 0x3c6   : > { %3832 = shalt.err (!%p3829_p10)
}
 0x3c7   : > { %3645 = dma.vmem_to_hbm [thread:$0]  (%p4021_p7), %s2504_s7, 256, %s5001_s10, %s2489_s6  }
 0x3c8 PF: > { %p3651_p11 = scmp.ge.s32.totalorder %s3915_s27, 2  ;;  %s2515_s17 = sand.u32 1, %s3879_s18  }
 0x3c9   : > { %s2516_s28 = scalar_lea.sflag [#allocation4], %s2515_s17 }
 0x3ca   : > { %p3648_p13 = pnand %p3651_p11, %p4029_p12 }
 0x3cc   : > { %3874 = dma.done.wait (!%p3648_p13), %s2516_s28, 256  }
 0x3cd   : > { %3876 = vsyncadd (!%p3648_p13), %s2516_s28, 4294967040  ;;  %s18_s27 = sadd.s32 1, %s3915_s27   ;;  %s5070_s11 = sld [smem:[#allocation6_spill]] }
 0x3ce   : > { %p15_p0 = scmp.ge.s32.totalorder %s18_s27, 6   ;;  %s5071_s18 = smov %s3883_s19 }
 0x3cf   : > { %s5072_s19 = smov %s3887_s20  ;;  %s5073_s20 = smov %s4034_s15 }
 0x3d0   : > { %s5074_s21 = smov %s3895_s22  ;;  %s5075_s22 = smov %s4037_s16 }
 0x3d1   : > { %s5076_s23 = smov %s3907_s25  ;;  %s5077_s24 = smov %s3911_s26 }
 0x3d2   : > { %s5078_s25 = smov %s5081_s30  ;;  %17 = sbr.rel (!%p15_p0) target bundleno = 6 (0x6), region = 129 }
 0x3d3   : > { %s5079_s26 = smov %s5070_s11 }
 0x3d9   :  { %2521 = vsyncpa [#allocation4], 1 }
 0x3da   :  { %2523 = vsyncpa [#allocation4 + $0x1], 1 }

</bundles_post_ra>
